<compile_context>
chip_gen: v5e
topology: v5e:2x2
jax: 0.10.0
libtpu: 0.0.40
codegen_flags: <defaults>
</compile_context>

<pallas_src>
import jax
import jax.numpy as jnp
from jax import lax
from jax.experimental import pallas as pl
from jax.experimental.pallas import tpu as pltpu

D_IN = 28 * 28      # 784
H = 256             # hidden width
N_CLASSES = 10
OUT_PAD = 128       # lane-dense head width (10 padded to 128)
NEG_BIG = -1e30     # finite "-inf" for masking pad lanes


def _mfvi_kernel(x_ref, e1_ref, e2_ref, e3_ref,
                 w1_ref, b1_ref, w2_ref, b2_ref, w3_ref, b3_ref,
                 out_ref):
    # ---- Layer 1: fused [mu | 0.5*logvar] matmul (784 -> 512) ----
    z1 = jnp.dot(x_ref[...].astype(jnp.bfloat16), w1_ref[...],
                 preferred_element_type=jnp.float32) + b1_ref[...]
    h1 = jnp.maximum(z1[:, :H] + e1_ref[...] * jnp.exp(z1[:, H:]), 0.0)

    # ---- Layer 2: fused matmul (256 -> 512) ----
    z2 = jnp.dot(h1.astype(jnp.bfloat16), w2_ref[...],
                 preferred_element_type=jnp.float32) + b2_ref[...]
    h2 = jnp.maximum(z2[:, :H] + e2_ref[...] * jnp.exp(z2[:, H:]), 0.0)

    # ---- Output head: fused matmul (256 -> 2*128), lane-padded ----
    z3 = jnp.dot(h2.astype(jnp.bfloat16), w3_ref[...],
                 preferred_element_type=jnp.float32) + b3_ref[...]
    logits = z3[:, :OUT_PAD] + e3_ref[...] * jnp.exp(z3[:, OUT_PAD:])

    # log_softmax over the first N_CLASSES lanes only (pad lanes masked out).
    lane = lax.broadcasted_iota(jnp.int32, logits.shape, 1)
    masked = jnp.where(lane < N_CLASSES, logits, NEG_BIG)
    m = jnp.max(masked, axis=-1, keepdims=True)
    s = masked - m
    lse = jnp.log(jnp.sum(jnp.exp(s), axis=-1, keepdims=True))
    out_ref[...] = s - lse


def _round_up(n, m):
    return ((n + m - 1) // m) * m


def pack_params(params):
    """Pack per-layer (mu, logvar) params into fused bf16 weights / f32 biases.

    The 0.5 factor of exp(0.5 * logvar) is folded into the logvar half so the
    kernel computes std = exp(z_logvar_half) directly.
    """
    def pad_cols(a, width):
        return jnp.pad(a, ((0, 0), (0, width - a.shape[1])))

    w1 = jnp.concatenate([params["w11"], 0.5 * params["w12"]], axis=1)
    b1 = jnp.concatenate([params["b11"], 0.5 * params["b12"]], axis=1)
    w2 = jnp.concatenate([params["w21"], 0.5 * params["w22"]], axis=1)
    b2 = jnp.concatenate([params["b21"], 0.5 * params["b22"]], axis=1)
    w3 = jnp.concatenate([pad_cols(params["wo1"], OUT_PAD),
                          pad_cols(0.5 * params["wo2"], OUT_PAD)], axis=1)
    b3 = jnp.concatenate([pad_cols(params["bo1"], OUT_PAD),
                          pad_cols(0.5 * params["bo2"], OUT_PAD)], axis=1)

    return {
        "w1": w1.astype(jnp.bfloat16), "b1": b1.astype(jnp.float32),
        "w2": w2.astype(jnp.bfloat16), "b2": b2.astype(jnp.float32),
        "w3": w3.astype(jnp.bfloat16), "b3": b3.astype(jnp.float32),
    }


def mfvi_dnn_forward(x, packed, eps, *, tb=256):
    """x: (B,1,28,28) or (B,784) f32; packed: pack_params output; eps: dict of
    N(0,1) noise (B,256),(B,256),(B,10). Returns log-probs (B,10) f32."""
    x2d = x.reshape(-1, D_IN).astype(jnp.float32)
    B = x2d.shape[0]

    # Batch tile: multiple of 8 sublanes, capped at 256 (MXU rows on v6e/v7x).
    TB = min(tb, _round_up(B, 8))
    Bp = _round_up(B, TB)

    def pad_rows(a, width):
        buf = jnp.zeros((Bp, width), jnp.float32)
        return buf.at[:B, :a.shape[1]].set(a.astype(jnp.float32))

    xp = pad_rows(x2d, D_IN)
    e1 = pad_rows(eps["e1"], H)
    e2 = pad_rows(eps["e2"], H)
    e3 = pad_rows(eps["e3"], OUT_PAD)     # pad 10 -> 128 lanes with zeros

    def batch_spec(width):
        return pl.BlockSpec((TB, width), lambda i: (i, 0))

    def const_spec(shape):
        return pl.BlockSpec(shape, lambda i: (0, 0))   # VMEM-resident weights

    out = pl.pallas_call(
        _mfvi_kernel,
        out_shape=jax.ShapeDtypeStruct((Bp, OUT_PAD), jnp.float32),
        grid=(Bp // TB,),
        in_specs=[
            batch_spec(D_IN), batch_spec(H), batch_spec(H), batch_spec(OUT_PAD),
            const_spec((D_IN, 2 * H)), const_spec((1, 2 * H)),
            const_spec((H, 2 * H)),    const_spec((1, 2 * H)),
            const_spec((H, 2 * OUT_PAD)), const_spec((1, 2 * OUT_PAD)),
        ],
        out_specs=pl.BlockSpec((TB, OUT_PAD), lambda i: (i, 0)),
        compiler_params=pltpu.CompilerParams(
            dimension_semantics=("parallel",)),
    )(xp, e1, e2, e3,
      packed["w1"], packed["b1"], packed["w2"], packed["b2"],
      packed["w3"], packed["b3"])

    return out[:B, :N_CLASSES]


def init_params(key):
    """Synthetic init matching the PyTorch module's parameter shapes.

    nn.Linear(in, out): weight (out,in) stored transposed as (in,out); bias (out,)
    stored as (1,out). Header(in,out): weight (in,out); bias (1,out).
    """
    ks = jax.random.split(key, 12)

    def w(k, shape, scale=0.05):
        return (scale * jax.random.normal(k, shape)).astype(jnp.float32)

    return {
        # mu path
        "w11": w(ks[0], (D_IN, H)), "b11": w(ks[1], (1, H)),
        "w21": w(ks[2], (H, H)),    "b21": w(ks[3], (1, H)),
        "wo1": w(ks[4], (H, N_CLASSES)), "bo1": w(ks[5], (1, N_CLASSES)),
        # logvar path (small weights, negative bias -> small variance)
        "w12": w(ks[6], (D_IN, H), 0.01), "b12": jnp.full((1, H), -6.0, jnp.float32),
        "w22": w(ks[7], (H, H), 0.01),    "b22": jnp.full((1, H), -6.0, jnp.float32),
        "wo2": w(ks[8], (H, N_CLASSES), 0.01),
        "bo2": jnp.full((1, N_CLASSES), -6.0, jnp.float32),
    }


def packed_reference(x, packed, eps):
    """Pure-JAX reference using the SAME packed bf16 weights / fused math as the
    kernel (so the comparison isolates kernel correctness, not quantization)."""
    x2d = x.reshape(-1, D_IN).astype(jnp.float32)
    B = x2d.shape[0]
    e3 = jnp.zeros((B, OUT_PAD), jnp.float32).at[:, :N_CLASSES].set(eps["e3"])

    def fused(h, w, b):
        return jnp.dot(h.astype(jnp.bfloat16), w,
                       preferred_element_type=jnp.float32) + b

    z1 = fused(x2d, packed["w1"], packed["b1"])
    h1 = jax.nn.relu(z1[:, :H] + eps["e1"] * jnp.exp(z1[:, H:]))
    z2 = fused(h1, packed["w2"], packed["b2"])
    h2 = jax.nn.relu(z2[:, :H] + eps["e2"] * jnp.exp(z2[:, H:]))
    z3 = fused(h2, packed["w3"], packed["b3"])
    logits = (z3[:, :OUT_PAD] + e3 * jnp.exp(z3[:, OUT_PAD:]))[:, :N_CLASSES]
    return jax.nn.log_softmax(logits, axis=1)


def f32_reference(x, params, eps):
    """Full-precision reference of the original module semantics (informational)."""
    x2d = x.reshape(-1, D_IN).astype(jnp.float32)
    mu1 = x2d @ params["w11"] + params["b11"]
    lv1 = x2d @ params["w12"] + params["b12"]
    h1 = jax.nn.relu(mu1 + eps["e1"] * jnp.exp(0.5 * lv1))
    mu2 = h1 @ params["w21"] + params["b21"]
    lv2 = h1 @ params["w22"] + params["b22"]
    h2 = jax.nn.relu(mu2 + eps["e2"] * jnp.exp(0.5 * lv2))
    mu3 = h2 @ params["wo1"] + params["bo1"]
    lv3 = h2 @ params["wo2"] + params["bo2"]
    logits = mu3 + eps["e3"] * jnp.exp(0.5 * lv3)
    return jax.nn.log_softmax(logits, axis=1)


if __name__ == "__main__":
    key = jax.random.PRNGKey(0)
    k_x, k_p, k_e1, k_e2, k_e3 = jax.random.split(key, 5)

    B = 8
    x = jax.random.normal(k_x, (B, 1, 28, 28), dtype=jnp.float32)
    params = init_params(k_p)
    packed = pack_params(params)
    eps = {
        "e1": jax.random.normal(k_e1, (B, H), dtype=jnp.float32),
        "e2": jax.random.normal(k_e2, (B, H), dtype=jnp.float32),
        "e3": jax.random.normal(k_e3, (B, N_CLASSES), dtype=jnp.float32),
    }

    out = mfvi_dnn_forward(x, packed, eps)
    out = jax.block_until_ready(out)
    assert out.shape == (B, N_CLASSES)

    # Tight check vs. matched-precision (bf16-weight) reference.
    ref = packed_reference(x, packed, eps)
    assert jnp.allclose(out, ref, atol=5e-3, rtol=5e-3), "mismatch vs packed JAX reference"

    # Rows of log_softmax must exponentiate-sum to 1.
    assert jnp.allclose(jnp.sum(jnp.exp(out), axis=1), 1.0, atol=1e-3)

    # Informational: deviation vs full-f32 original-semantics reference
    # (bf16 weight quantization only; not asserted).
    ref32 = f32_reference(x, params, eps)
    _ = float(jnp.max(jnp.abs(out - ref32)))  # e.g. ~1e-2 from bf16 weights

    print("KERNEL_OK")
</pallas_src>

<mosaic_0001>
module attributes {stable_mosaic.version = 11 : i64} {
  func.func @_mfvi_kernel(%arg0: i32, %arg1: memref<8x784xf32, #tpu.memory_space<vmem>>, %arg2: memref<8x256xf32, #tpu.memory_space<vmem>>, %arg3: memref<8x256xf32, #tpu.memory_space<vmem>>, %arg4: memref<8x128xf32, #tpu.memory_space<vmem>>, %arg5: memref<784x512xbf16, #tpu.memory_space<vmem>>, %arg6: memref<1x512xf32, #tpu.memory_space<vmem>>, %arg7: memref<256x512xbf16, #tpu.memory_space<vmem>>, %arg8: memref<1x512xf32, #tpu.memory_space<vmem>>, %arg9: memref<256x256xbf16, #tpu.memory_space<vmem>>, %arg10: memref<1x256xf32, #tpu.memory_space<vmem>>, %arg11: memref<8x128xf32, #tpu.memory_space<vmem>>) attributes {dimension_semantics = [#tpu.dimension_semantics<parallel>], iteration_bounds = array<i64: 1>, scalar_prefetch = 0 : i64, scratch_operands = 0 : i64, tpu.core_type = #tpu.core_type<tc>, window_params = [{transform_indices = @transform_0, window_bounds = array<i64: 8, 784>}, {transform_indices = @transform_1, window_bounds = array<i64: 8, 256>}, {transform_indices = @transform_2, window_bounds = array<i64: 8, 256>}, {transform_indices = @transform_3, window_bounds = array<i64: 8, 128>}, {pipeline_mode = #tpu.pipeline_mode<synchronous>, transform_indices = @transform_4, window_bounds = array<i64: 784, 512>}, {pipeline_mode = #tpu.pipeline_mode<synchronous>, transform_indices = @transform_5, window_bounds = array<i64: 1, 512>}, {pipeline_mode = #tpu.pipeline_mode<synchronous>, transform_indices = @transform_6, window_bounds = array<i64: 256, 512>}, {pipeline_mode = #tpu.pipeline_mode<synchronous>, transform_indices = @transform_7, window_bounds = array<i64: 1, 512>}, {pipeline_mode = #tpu.pipeline_mode<synchronous>, transform_indices = @transform_8, window_bounds = array<i64: 256, 256>}, {pipeline_mode = #tpu.pipeline_mode<synchronous>, transform_indices = @transform_9, window_bounds = array<i64: 1, 256>}, {transform_indices = @transform_10, window_bounds = array<i64: 8, 128>}]} {
    %c0 = arith.constant 0 : index
    %c0_0 = arith.constant 0 : index
    %0 = vector.load %arg1[%c0, %c0_0] : memref<8x784xf32, #tpu.memory_space<vmem>>, vector<8x784xf32>
    %1 = arith.truncf %0 : vector<8x784xf32> to vector<8x784xbf16>
    %c0_1 = arith.constant 0 : index
    %c0_2 = arith.constant 0 : index
    %2 = vector.load %arg5[%c0_1, %c0_2] : memref<784x512xbf16, #tpu.memory_space<vmem>>, vector<784x512xbf16>
    %cst = arith.constant dense<0.000000e+00> : vector<8x512xf32>
    %3 = tpu.matmul %1, %2, %cst {dimension_numbers = #tpu.dot_dimension_numbers<[1], [0], [0], [1], [0, 0, 1, 1], [], []>} : vector<8x784xbf16>, vector<784x512xbf16>, vector<8x512xf32> -> vector<8x512xf32>
    %c0_3 = arith.constant 0 : index
    %c0_4 = arith.constant 0 : index
    %4 = vector.load %arg6[%c0_3, %c0_4] : memref<1x512xf32, #tpu.memory_space<vmem>>, vector<1x512xf32>
    %5 = vector.broadcast %4 : vector<1x512xf32> to vector<8x512xf32>
    %6 = arith.addf %3, %5 : vector<8x512xf32>
    %7 = vector.extract_strided_slice %6 {offsets = [0, 0], sizes = [8, 256], strides = [1, 1]} : vector<8x512xf32> to vector<8x256xf32>
    %c0_5 = arith.constant 0 : index
    %c0_6 = arith.constant 0 : index
    %8 = vector.load %arg2[%c0_5, %c0_6] : memref<8x256xf32, #tpu.memory_space<vmem>>, vector<8x256xf32>
    %9 = vector.extract_strided_slice %6 {offsets = [0, 256], sizes = [8, 256], strides = [1, 1]} : vector<8x512xf32> to vector<8x256xf32>
    %10 = math.exp %9 : vector<8x256xf32>
    %11 = arith.mulf %8, %10 : vector<8x256xf32>
    %12 = arith.addf %7, %11 : vector<8x256xf32>
    %cst_7 = arith.constant 0.000000e+00 : f32
    %13 = vector.broadcast %cst_7 : f32 to vector<8x256xf32>
    %14 = arith.maximumf %12, %13 : vector<8x256xf32>
    %15 = arith.truncf %14 : vector<8x256xf32> to vector<8x256xbf16>
    %c0_8 = arith.constant 0 : index
    %c0_9 = arith.constant 0 : index
    %16 = vector.load %arg7[%c0_8, %c0_9] : memref<256x512xbf16, #tpu.memory_space<vmem>>, vector<256x512xbf16>
    %cst_10 = arith.constant dense<0.000000e+00> : vector<8x512xf32>
    %17 = tpu.matmul %15, %16, %cst_10 {dimension_numbers = #tpu.dot_dimension_numbers<[1], [0], [0], [1], [0, 0, 1, 1], [], []>} : vector<8x256xbf16>, vector<256x512xbf16>, vector<8x512xf32> -> vector<8x512xf32>
    %c0_11 = arith.constant 0 : index
    %c0_12 = arith.constant 0 : index
    %18 = vector.load %arg8[%c0_11, %c0_12] : memref<1x512xf32, #tpu.memory_space<vmem>>, vector<1x512xf32>
    %19 = vector.broadcast %18 : vector<1x512xf32> to vector<8x512xf32>
    %20 = arith.addf %17, %19 : vector<8x512xf32>
    %21 = vector.extract_strided_slice %20 {offsets = [0, 0], sizes = [8, 256], strides = [1, 1]} : vector<8x512xf32> to vector<8x256xf32>
    %c0_13 = arith.constant 0 : index
    %c0_14 = arith.constant 0 : index
    %22 = vector.load %arg3[%c0_13, %c0_14] : memref<8x256xf32, #tpu.memory_space<vmem>>, vector<8x256xf32>
    %23 = vector.extract_strided_slice %20 {offsets = [0, 256], sizes = [8, 256], strides = [1, 1]} : vector<8x512xf32> to vector<8x256xf32>
    %24 = math.exp %23 : vector<8x256xf32>
    %25 = arith.mulf %22, %24 : vector<8x256xf32>
    %26 = arith.addf %21, %25 : vector<8x256xf32>
    %cst_15 = arith.constant 0.000000e+00 : f32
    %27 = vector.broadcast %cst_15 : f32 to vector<8x256xf32>
    %28 = arith.maximumf %26, %27 : vector<8x256xf32>
    %29 = arith.truncf %28 : vector<8x256xf32> to vector<8x256xbf16>
    %c0_16 = arith.constant 0 : index
    %c0_17 = arith.constant 0 : index
    %30 = vector.load %arg9[%c0_16, %c0_17] : memref<256x256xbf16, #tpu.memory_space<vmem>>, vector<256x256xbf16>
    %cst_18 = arith.constant dense<0.000000e+00> : vector<8x256xf32>
    %31 = tpu.matmul %29, %30, %cst_18 {dimension_numbers = #tpu.dot_dimension_numbers<[1], [0], [0], [1], [0, 0, 1, 1], [], []>} : vector<8x256xbf16>, vector<256x256xbf16>, vector<8x256xf32> -> vector<8x256xf32>
    %c0_19 = arith.constant 0 : index
    %c0_20 = arith.constant 0 : index
    %32 = vector.load %arg10[%c0_19, %c0_20] : memref<1x256xf32, #tpu.memory_space<vmem>>, vector<1x256xf32>
    %33 = vector.broadcast %32 : vector<1x256xf32> to vector<8x256xf32>
    %34 = arith.addf %31, %33 : vector<8x256xf32>
    %35 = vector.extract_strided_slice %34 {offsets = [0, 0], sizes = [8, 128], strides = [1, 1]} : vector<8x256xf32> to vector<8x128xf32>
    %c0_21 = arith.constant 0 : index
    %c0_22 = arith.constant 0 : index
    %36 = vector.load %arg4[%c0_21, %c0_22] : memref<8x128xf32, #tpu.memory_space<vmem>>, vector<8x128xf32>
    %37 = vector.extract_strided_slice %34 {offsets = [0, 128], sizes = [8, 128], strides = [1, 1]} : vector<8x256xf32> to vector<8x128xf32>
    %38 = math.exp %37 : vector<8x128xf32>
    %39 = arith.mulf %36, %38 : vector<8x128xf32>
    %40 = arith.addf %35, %39 : vector<8x128xf32>
    %41 = tpu.iota {dimensions = array<i32: 1>} : vector<8x128xi32>
    %c10_i32 = arith.constant 10 : i32
    %42 = vector.broadcast %c10_i32 : i32 to vector<8x128xi32>
    %43 = arith.cmpi slt, %41, %42 : vector<8x128xi32>
    %cst_23 = arith.constant -1.000000e+30 : f32
    %44 = vector.broadcast %cst_23 : f32 to vector<8x128xf32>
    %45 = arith.select %43, %40, %44 : vector<8x128xi1>, vector<8x128xf32>
    %cst_24 = arith.constant dense<0xFF800000> : vector<8xf32>
    %46 = vector.multi_reduction <maximumf>, %45, %cst_24 [1] : vector<8x128xf32> to vector<8xf32>
    %47 = vector.shape_cast %46 : vector<8xf32> to vector<8x1xf32>
    %48 = vector.broadcast %47 : vector<8x1xf32> to vector<8x128xf32>
    %49 = arith.subf %45, %48 : vector<8x128xf32>
    %50 = math.exp %49 : vector<8x128xf32>
    %cst_25 = arith.constant dense<0.000000e+00> : vector<8xf32>
    %51 = vector.multi_reduction <add>, %50, %cst_25 [1] : vector<8x128xf32> to vector<8xf32>
    %52 = vector.shape_cast %51 : vector<8xf32> to vector<8x1xf32>
    %53 = math.log %52 : vector<8x1xf32>
    %54 = vector.broadcast %53 : vector<8x1xf32> to vector<8x128xf32>
    %55 = arith.subf %49, %54 : vector<8x128xf32>
    %c0_26 = arith.constant 0 : index
    %c0_27 = arith.constant 0 : index
    %56 = vector.load %arg11[%c0_26, %c0_27] : memref<8x128xf32, #tpu.memory_space<vmem>>, vector<8x128xf32>
    tpu.vector_store %arg11[%c0_26, %c0_27], %55 {strides = array<i32>} : memref<8x128xf32, #tpu.memory_space<vmem>>, vector<8x128xf32>,
    return
  }
  func.func @transform_0(%arg0: i32) -> (i32, i32) {
    %c0_i32 = arith.constant 0 : i32
    %c0_i32_0 = arith.constant 0 : i32
    return %arg0, %c0_i32 : i32, i32
  }
  func.func @transform_1(%arg0: i32) -> (i32, i32) {
    %c0_i32 = arith.constant 0 : i32
    %c0_i32_0 = arith.constant 0 : i32
    return %arg0, %c0_i32 : i32, i32
  }
  func.func @transform_2(%arg0: i32) -> (i32, i32) {
    %c0_i32 = arith.constant 0 : i32
    %c0_i32_0 = arith.constant 0 : i32
    return %arg0, %c0_i32 : i32, i32
  }
  func.func @transform_3(%arg0: i32) -> (i32, i32) {
    %c0_i32 = arith.constant 0 : i32
    %c0_i32_0 = arith.constant 0 : i32
    return %arg0, %c0_i32 : i32, i32
  }
  func.func @transform_4(%arg0: i32) -> (i32, i32) {
    %c0_i32 = arith.constant 0 : i32
    %c0_i32_0 = arith.constant 0 : i32
    %c0_i32_1 = arith.constant 0 : i32
    return %c0_i32, %c0_i32_0 : i32, i32
  }
  func.func @transform_5(%arg0: i32) -> (i32, i32) {
    %c0_i32 = arith.constant 0 : i32
    %c0_i32_0 = arith.constant 0 : i32
    %c0_i32_1 = arith.constant 0 : i32
    return %c0_i32, %c0_i32_0 : i32, i32
  }
  func.func @transform_6(%arg0: i32) -> (i32, i32) {
    %c0_i32 = arith.constant 0 : i32
    %c0_i32_0 = arith.constant 0 : i32
    %c0_i32_1 = arith.constant 0 : i32
    return %c0_i32, %c0_i32_0 : i32, i32
  }
  func.func @transform_7(%arg0: i32) -> (i32, i32) {
    %c0_i32 = arith.constant 0 : i32
    %c0_i32_0 = arith.constant 0 : i32
    %c0_i32_1 = arith.constant 0 : i32
    return %c0_i32, %c0_i32_0 : i32, i32
  }
  func.func @transform_8(%arg0: i32) -> (i32, i32) {
    %c0_i32 = arith.constant 0 : i32
    %c0_i32_0 = arith.constant 0 : i32
    %c0_i32_1 = arith.constant 0 : i32
    return %c0_i32, %c0_i32_0 : i32, i32
  }
  func.func @transform_9(%arg0: i32) -> (i32, i32) {
    %c0_i32 = arith.constant 0 : i32
    %c0_i32_0 = arith.constant 0 : i32
    %c0_i32_1 = arith.constant 0 : i32
    return %c0_i32, %c0_i32_0 : i32, i32
  }
  func.func @transform_10(%arg0: i32) -> (i32, i32) {
    %c0_i32 = arith.constant 0 : i32
    %c0_i32_0 = arith.constant 0 : i32
    return %arg0, %c0_i32 : i32, i32
  }
}

</mosaic_0001>

<bundles_post_ra>
// kernel: tpu_custom_call.1
= control target key start
LH: loop header
LB: loop body
LE: loop exit
PB: predicated region body
PF: predicated region fallthrough
CT: control target
= control target key end

     0   :  { %15 = vsyncpa [#allocation3], 0  ;;  %s4448_s0 = inlined_call_operand.hbm [shape: f32[8,784], index: 0, kind: input, shape index: {}]   ;;  %s4449_s1 = inlined_call_operand.hbm [shape: f32[8,256], index: 1, kind: input, shape index: {}]   ;;  %s4450_s2 = inlined_call_operand.hbm [shape: f32[8,256], index: 2, kind: input, shape index: {}]   ;;  %s4451_s3 = inlined_call_operand.hbm [shape: f32[8,128], index: 3, kind: input, shape index: {}]   ;;  %s4452_s4 = inlined_call_operand.hbm [shape: bf16[784,512], index: 4, kind: input, shape index: {}]   ;;  %s4453_s5 = inlined_call_operand.vmem [shape: f32[1,512], index: 5, kind: input, shape index: {}]   ;;  %s4454_s6 = inlined_call_operand.hbm [shape: bf16[256,512], index: 6, kind: input, shape index: {}]   ;;  %s4455_s7 = inlined_call_operand.hbm [shape: f32[1,512], index: 7, kind: input, shape index: {}]   ;;  %s4456_s8 = inlined_call_operand.hbm [shape: bf16[256,256], index: 8, kind: input, shape index: {}]   ;;  %s4457_s9 = inlined_call_operand.vmem [shape: f32[1,256], index: 9, kind: input, shape index: {}]   ;;  %s4458_s10 = inlined_call_operand.hbm [shape: f32[8,128], index: 10, kind: output, shape index: {}]  }
   0x1   :  { %16 = vsyncpa [#allocation6], 0 }
   0x2   :  { %17 = vsyncpa [#allocation9], 0 }
   0x3   :  { %18 = vsyncpa [#allocation12], 0 }
   0x4   :  { %19 = vsyncpa [#allocation15], 0  ;;  %s37_s15 = sshll.u32 %s4449_s1, 4  ;;  %s38_s15 = int_to_ptr.hbm [resolvable:$true] %s37_s15 }
   0x5   :  { %20 = vsyncpa [#allocation4], 0  ;;  %s4256_s16 = smov [#allocation5]   ;;  %s59_s20 = sshll.u32 %s4451_s3, 4  ;;  %s60_s20 = int_to_ptr.hbm [resolvable:$true] %s59_s20 }
   0x6   :  { %s39_s17 = sshll.u32 %s4256_s16, 4  ;;  %s4257_s21 = smov [#allocation8]   ;;  %s40_s17 = int_to_ptr.vmem [resolvable:$true] %s39_s17 }
   0x7   :  { %42 = dma.hbm_to_vmem [thread:$0]  %s38_s15, 256, %s40_s17, [#allocation6]  }
   0x8   :  { %s61_s22 = sshll.u32 %s4257_s21, 4  ;;  %s84_s25 = sshll.u32 %s4454_s6, 4  ;;  %s62_s22 = int_to_ptr.vmem [resolvable:$true] %s61_s22  ;;  %s85_s25 = int_to_ptr.hbm [resolvable:$true] %s84_s25 }
   0x9   :  { %64 = dma.hbm_to_vmem [thread:$0]  %s60_s20, 128, %s62_s22, [#allocation9]  }
   0xa   :  { %s4258_s1 = smov [#allocation11]   ;;  %s26_s29 = sshll.u32 %s4448_s0, 4  ;;  %s27_s29 = int_to_ptr.hbm [resolvable:$true] %s26_s29 }
   0xb   :  { %s86_s26 = sshll.u32 %s4258_s1, 4  ;;  %s4259_s30 = smov 256   ;;  %s87_s26 = int_to_ptr.vmem [resolvable:$true] %s86_s26 }
   0xc   :  { %s4260_s3 = smov 16   ;;  %s4261_s11 = smov [#allocation2]  }
   0xd   :  { %92 = dma.hbm_to_vmem [thread:$0]  %s85_s25, 8192, %s87_s26, [#allocation12], %s4259_s30, %s4259_s30, %s4260_s3  }
   0xe   :  { %s28_s12 = sshll.u32 %s4261_s11, 4  ;;  %s48_s15 = sshll.u32 %s4450_s2, 4  ;;  %s29_s12 = int_to_ptr.vmem [resolvable:$true] %s28_s12  ;;  %s49_s15 = int_to_ptr.hbm [resolvable:$true] %s48_s15 }
   0xf   :  { %31 = dma.hbm_to_vmem [thread:$0]  %s27_s29, 896, %s29_s12, [#allocation3]  }
  0x10   :  { %s69_s17 = sshll.u32 %s4452_s4, 4  ;;  %s4262_s18 = smov [#allocation7]   ;;  %s70_s17 = int_to_ptr.hbm [resolvable:$true] %s69_s17 }
  0x11   :  { %s50_s19 = sshll.u32 %s4262_s18, 4  ;;  %s4263_s0 = smov [#allocation10]   ;;  %s51_s19 = int_to_ptr.vmem [resolvable:$true] %s50_s19 }
  0x12   :  { %53 = dma.hbm_to_vmem [thread:$0]  %s49_s15, 256, %s51_s19, [#allocation6]  }
  0x13   :  { %s71_s20 = sshll.u32 %s4263_s0, 4  ;;  %s98_s23 = sshll.u32 %s4455_s7, 4  ;;  %s72_s20 = int_to_ptr.vmem [resolvable:$true] %s71_s20  ;;  %s99_s23 = int_to_ptr.hbm [resolvable:$true] %s98_s23 }
  0x14   :  { %77 = dma.hbm_to_vmem [thread:$0]  %s70_s17, 25088, %s72_s20, [#allocation9], %s4259_s30, %s4259_s30, %s4260_s3  }
  0x15   :  { %s108_s25 = sshll.u32 %s4456_s8, 4  ;;  %s4264_s1 = smov [#allocation13]   ;;  %s109_s25 = int_to_ptr.hbm [resolvable:$true] %s108_s25 }
  0x16   :  { %s100_s4 = sshll.u32 %s4264_s1, 4  ;;  %s4265_s26 = smov [#allocation14]   ;;  %s101_s4 = int_to_ptr.vmem [resolvable:$true] %s100_s4 }
  0x17   :  { %103 = dma.hbm_to_vmem [thread:$0]  %s99_s23, 64, %s101_s4, [#allocation12]  }
  0x18   :  { %s110_s27 = sshll.u32 %s4265_s26, 4  ;;  %s4266_s28 = smov 128   ;;  %s111_s27 = int_to_ptr.vmem [resolvable:$true] %s110_s27 }
  0x19   :  { %s4267_s29 = smov 8  }
  0x1a   :  { %116 = dma.hbm_to_vmem [thread:$0]  %s109_s25, 4096, %s111_s27, [#allocation15], %s4266_s28, %s4266_s28, %s4267_s29  }
  0x1b   :  { %4244 = dma.done.wait [#allocation3], 896  }
  0x1c   :  { %4245 = vsyncadd [#allocation3], 4294966400 }
  0x1d   :  { %4246 = dma.done.wait [#allocation6], 512  }
  0x1e   :  { %4247 = vsyncadd [#allocation6], 4294966784 }
  0x1f   :  { %4248 = dma.done.wait [#allocation9], 25216  }
  0x20   :  { %4249 = vsyncadd [#allocation9], 4294942080 }
  0x21   :  { %4250 = dma.done.wait [#allocation12], 8256  }
  0x22   :  { %4251 = vsyncadd [#allocation12], 4294959040 }
  0x23   :  { %4252 = dma.done.wait [#allocation15], 4096  }
  0x24   :  { %4253 = vsyncadd [#allocation15], 4294963200  ;;  %v2651_v0 = vld [vmem:[#allocation10 + $0xe0] sm:$0xf]  ;;  %v3739_v1 = vld [vmem:[#allocation10 + $0xec] sm:$0xf0] }
  0x25   :  { %v2779_v2 = vld [vmem:[#allocation10 + $0x1e0] sm:$0xf]  ;;  %v2652_v3 = vor.u32 %v3739_v1, %v2651_v0  ;;  %v3771_v4 = vld [vmem:[#allocation10 + $0x1ec] sm:$0xf0]  ;;  %vm1352_vm0 = vcmask 130048   ;;  %s2523_s13 = sshll.u32 %s4458_s10, 4  ;;  %s2524_s13 = int_to_ptr.hbm [resolvable:$true] %s2523_s13 }
  0x26   :  { %v2907_v5 = vld [vmem:[#allocation10 + $0x2e0] sm:$0xf]  ;;  %v3803_v6 = vld [vmem:[#allocation10 + $0x2ec] sm:$0xf0]  ;;  %v2780_v7 = vor.u32 %v3771_v4, %v2779_v2 }
  0x27   :  { %v2908_v8 = vor.u32 %v3803_v6, %v2907_v5  ;;  %v3035_v9 = vld [vmem:[#allocation10 + $0x3e0] sm:$0xf]  ;;  %v3835_v10 = vld [vmem:[#allocation10 + $0x3ec] sm:$0xf0]  ;;  %1356 = vmatpush.bf16.msra.mxu0 %v2652_v3 }
  0x28   :  { %v2635_v11 = vld [vmem:[#allocation10 + $0xc0] sm:$0xf]  ;;  %v3036_v12 = vor.u32 %v3835_v10, %v3035_v9  ;;  %v3735_v13 = vld [vmem:[#allocation10 + $0xcc] sm:$0xf0]  ;;  %1369 = vmatpush.bf16.msra.mxu1 %v2780_v7 }
  0x29   :  { %v2763_v14 = vld [vmem:[#allocation10 + $0x1c0] sm:$0xf]  ;;  %v3767_v15 = vld [vmem:[#allocation10 + $0x1cc] sm:$0xf0]  ;;  %1382 = vmatpush.bf16.msra.mxu2 %v2908_v8  ;;  %v2636_v16 = vor.u32 %v3735_v13, %v2635_v11 }
  0x2a   :  { %v2764_v17 = vor.u32 %v3767_v15, %v2763_v14  ;;  %v2891_v18 = vld [vmem:[#allocation10 + $0x2c0] sm:$0xf]  ;;  %v3799_v19 = vld [vmem:[#allocation10 + $0x2cc] sm:$0xf0]  ;;  %1395 = vmatpush.bf16.msra.mxu3 %v3036_v12 }
  0x2b   :  { %v3019_v20 = vld [vmem:[#allocation10 + $0x3c0] sm:$0xf]  ;;  %v2892_v21 = vor.u32 %v3799_v19, %v2891_v18  ;;  %v3831_v22 = vld [vmem:[#allocation10 + $0x3cc] sm:$0xf0]  ;;  %1357 = vmatpush.bf16.msra.mxu0 %v2636_v16 }
  0x2c   :  { %v2619_v23 = vld [vmem:[#allocation10 + $0xa0] sm:$0xf]  ;;  %v3731_v24 = vld [vmem:[#allocation10 + $0xac] sm:$0xf0]  ;;  %v3020_v25 = vor.u32 %v3831_v22, %v3019_v20  ;;  %1370 = vmatpush.bf16.msra.mxu1 %v2764_v17 }
  0x2d   :  { %v2747_v26 = vld [vmem:[#allocation10 + $0x1a0] sm:$0xf]  ;;  %v3763_v27 = vld [vmem:[#allocation10 + $0x1ac] sm:$0xf0]  ;;  %v2620_v29 = vor.u32 %v3731_v24, %v2619_v23  ;;  %1383 = vmatpush.bf16.msra.mxu2 %v2892_v21 }
  0x2e   :  { %v2875_v28 = vld [vmem:[#allocation10 + $0x2a0] sm:$0xf]  ;;  %v3795_v30 = vld [vmem:[#allocation10 + $0x2ac] sm:$0xf0]  ;;  %v2748_v33 = vor.u32 %v3763_v27, %v2747_v26  ;;  %1396 = vmatpush.bf16.msra.mxu3 %v3020_v25 }
  0x2f   :  { %v3003_v31 = vld [vmem:[#allocation10 + $0x3a0] sm:$0xf]  ;;  %v3827_v32 = vld [vmem:[#allocation10 + $0x3ac] sm:$0xf0]  ;;  %v2876_v34 = vor.u32 %v3795_v30, %v2875_v28  ;;  %1358 = vmatpush.bf16.msra.mxu0 %v2620_v29 }
  0x30   :  { %v2603_v35 = vld [vmem:[#allocation10 + $0x80] sm:$0xf]  ;;  %v3727_v36 = vld [vmem:[#allocation10 + $0x8c] sm:$0xf0]  ;;  %v3004_v38 = vor.u32 %v3827_v32, %v3003_v31  ;;  %1371 = vmatpush.bf16.msra.mxu1 %v2748_v33  ;;  %v3737_v33 = vld [vmem:[#allocation10 + $0xe4] sm:$0xf] }
  0x31   :  { %v2731_v37 = vld [vmem:[#allocation10 + $0x180] sm:$0xf]  ;;  %v3759_v39 = vld [vmem:[#allocation10 + $0x18c] sm:$0xf0]  ;;  %v2604_v44 = vor.u32 %v3727_v36, %v2603_v35  ;;  %1384 = vmatpush.bf16.msra.mxu2 %v2876_v34  ;;  %v2653_v34 = vld [vmem:[#allocation10 + $0xf0] sm:$0xf0] }
  0x32   :  { %v2859_v40 = vld [vmem:[#allocation10 + $0x280] sm:$0xf]  ;;  %v3791_v41 = vld [vmem:[#allocation10 + $0x28c] sm:$0xf0]  ;;  %v2732_v45 = vor.u32 %v3759_v39, %v2731_v37  ;;  %1397 = vmatpush.bf16.msra.mxu3 %v3004_v38 }
  0x33   :  { %v2987_v42 = vld [vmem:[#allocation10 + $0x380] sm:$0xf]  ;;  %v3823_v43 = vld [vmem:[#allocation10 + $0x38c] sm:$0xf0]  ;;  %v2860_v46 = vor.u32 %v3791_v41, %v2859_v40  ;;  %1359 = vmatpush.bf16.msra.mxu0 %v2604_v44  ;;  %v2781_v44 = vld [vmem:[#allocation10 + $0x1f0] sm:$0xf0] }
  0x34   :  { %v2587_v47 = vld [vmem:[#allocation10 + $0x60] sm:$0xf]  ;;  %v3723_v48 = vld [vmem:[#allocation10 + $0x6c] sm:$0xf0]  ;;  %v2988_v50 = vor.u32 %v3823_v43, %v2987_v42  ;;  %1372 = vmatpush.bf16.msra.mxu1 %v2732_v45  ;;  %v3769_v43 = vld [vmem:[#allocation10 + $0x1e4] sm:$0xf] }
  0x35   :  { %v2715_v49 = vld [vmem:[#allocation10 + $0x160] sm:$0xf]  ;;  %v3755_v51 = vld [vmem:[#allocation10 + $0x16c] sm:$0xf0]  ;;  %v2588_v56 = vor.u32 %v3723_v48, %v2587_v47  ;;  %1385 = vmatpush.bf16.msra.mxu2 %v2860_v46  ;;  %v155_v45 = vld [vmem:[#allocation2 + $0x18] sm:$0xff]  ;;  %v2656_v47 = vor.u32 %v3737_v33, %v2653_v34 }
  0x36   :  { %v2843_v52 = vld [vmem:[#allocation10 + $0x260] sm:$0xf]  ;;  %v3787_v53 = vld [vmem:[#allocation10 + $0x26c] sm:$0xf0]  ;;  %v2716_v57 = vor.u32 %v3755_v51, %v2715_v49  ;;  %1398 = vmatpush.bf16.msra.mxu3 %v2988_v50 }
  0x37   :  { %v2971_v54 = vld [vmem:[#allocation10 + $0x360] sm:$0xf]  ;;  %v3819_v55 = vld [vmem:[#allocation10 + $0x36c] sm:$0xf0]  ;;  %v2844_v58 = vor.u32 %v3787_v53, %v2843_v52  ;;  %1360 = vmatpush.bf16.msra.mxu0 %v2588_v56  ;;  %v3733_v53 = vld [vmem:[#allocation10 + $0xc4] sm:$0xf] }
  0x38   :  { %v2571_v59 = vld [vmem:[#allocation10 + $0x40] sm:$0xf]  ;;  %v3719_v60 = vld [vmem:[#allocation10 + $0x4c] sm:$0xf0]  ;;  %v2972_v62 = vor.u32 %v3819_v55, %v2971_v54  ;;  %1373 = vmatpush.bf16.msra.mxu1 %v2716_v57  ;;  %v2637_v54 = vld [vmem:[#allocation10 + $0xd0] sm:$0xf0]  ;;  %v4352_v57 = vpack.c.bf16 %v155_v45, %v155_v45 }
  0x39   :  { %v2699_v61 = vld [vmem:[#allocation10 + $0x140] sm:$0xf]  ;;  %v3751_v63 = vld [vmem:[#allocation10 + $0x14c] sm:$0xf0]  ;;  %v2572_v4 = vor.u32 %v3719_v60, %v2571_v59  ;;  %1386 = vmatpush.bf16.msra.mxu2 %v2844_v58  ;;  %v153_v58 = vld [vmem:[#allocation2 + $0x8] sm:$0xff]  ;;  %v2784_v59 = vor.u32 %v3769_v43, %v2781_v44 }
  0x3a   :  { %v2827_v0 = vld [vmem:[#allocation10 + $0x240] sm:$0xf]  ;;  %v3783_v1 = vld [vmem:[#allocation10 + $0x24c] sm:$0xf0]  ;;  %v2700_v5 = vor.u32 %v3751_v63, %v2699_v61  ;;  %1399 = vmatpush.bf16.msra.mxu3 %v2972_v62  ;;  %v3765_v61 = vld [vmem:[#allocation10 + $0x1c4] sm:$0xf] }
  0x3b   :  { %v2955_v2 = vld [vmem:[#allocation10 + $0x340] sm:$0xf]  ;;  %v3815_v3 = vld [vmem:[#allocation10 + $0x34c] sm:$0xf0]  ;;  %v2828_v6 = vor.u32 %v3783_v1, %v2827_v0  ;;  %1361 = vmatpush.bf16.msra.mxu0 %v2572_v4  ;;  %v2765_v62 = vld [vmem:[#allocation10 + $0x1d0] sm:$0xf0]  ;;  %v2640_v0 = vor.u32 %v3733_v53, %v2637_v54 }
  0x3c   :  { %v2555_v7 = vld [vmem:[#allocation10 + $0x20] sm:$0xf]  ;;  %v3715_v8 = vld [vmem:[#allocation10 + $0x2c] sm:$0xf0]  ;;  %v2956_v10 = vor.u32 %v3815_v3, %v2955_v2  ;;  %1374 = vmatpush.bf16.msra.mxu1 %v2700_v5  ;;  %v3729_v5 = vld [vmem:[#allocation10 + $0xa4] sm:$0xf] }
  0x3d   :  { %v2683_v9 = vld [vmem:[#allocation10 + $0x120] sm:$0xf]  ;;  %v3747_v11 = vld [vmem:[#allocation10 + $0x12c] sm:$0xf0]  ;;  %v2556_v16 = vor.u32 %v3715_v8, %v2555_v7  ;;  %1387 = vmatpush.bf16.msra.mxu2 %v2828_v6  ;;  %v2621_v6 = vld [vmem:[#allocation10 + $0xb0] sm:$0xf0]  ;;  %v4356_v7 = vpack.c.bf16 %v153_v58, %v153_v58  ;;  %v2768_v8 = vor.u32 %v3765_v61, %v2765_v62 }
  0x3e   :  { %v2811_v12 = vld [vmem:[#allocation10 + $0x220] sm:$0xf]  ;;  %v3779_v13 = vld [vmem:[#allocation10 + $0x22c] sm:$0xf0]  ;;  %v2684_v20 = vor.u32 %v3747_v11, %v2683_v9  ;;  %1400 = vmatpush.bf16.msra.mxu3 %v2956_v10  ;;  %v3761_v10 = vld [vmem:[#allocation10 + $0x1a4] sm:$0xf] }
  0x3f   :  { %v2939_v14 = vld [vmem:[#allocation10 + $0x320] sm:$0xf]  ;;  %v3811_v15 = vld [vmem:[#allocation10 + $0x32c] sm:$0xf0]  ;;  %v2812_v21 = vor.u32 %v3779_v13, %v2811_v12  ;;  %1362 = vmatpush.bf16.msra.mxu0 %v2556_v16  ;;  %v2749_v11 = vld [vmem:[#allocation10 + $0x1b0] sm:$0xf0]  ;;  %v2624_v13 = vor.u32 %v3729_v5, %v2621_v6 }
  0x40   :  { %v2539_v17 = vld [vmem:[#allocation10] sm:$0xf]  ;;  %v3711_v18 = vld [vmem:[#allocation10 + $0xc] sm:$0xf0]  ;;  %v2940_v25 = vor.u32 %v3811_v15, %v2939_v14  ;;  %1375 = vmatpush.bf16.msra.mxu1 %v2684_v20  ;;  %v2752_v20 = vor.u32 %v3761_v10, %v2749_v11  ;;  %v3717_v43 = vld [vmem:[#allocation10 + $0x44] sm:$0xf] }
  0x41   :  { %v2667_v19 = vld [vmem:[#allocation10 + $0x100] sm:$0xf]  ;;  %v3743_v22 = vld [vmem:[#allocation10 + $0x10c] sm:$0xf0]  ;;  %v2540_v32 = vor.u32 %v3711_v18, %v2539_v17  ;;  %1388 = vmatpush.bf16.msra.mxu2 %v2812_v21  ;;  %v3725_v18 = vld [vmem:[#allocation10 + $0x84] sm:$0xf] }
  0x42   :  { %v2795_v23 = vld [vmem:[#allocation10 + $0x200] sm:$0xf]  ;;  %v3775_v24 = vld [vmem:[#allocation10 + $0x20c] sm:$0xf0]  ;;  %v2668_v36 = vor.u32 %v3743_v22, %v2667_v19  ;;  %1401 = vmatpush.bf16.msra.mxu3 %v2940_v25  ;;  %v2605_v19 = vld [vmem:[#allocation10 + $0x90] sm:$0xf0] }
  0x43   :  { %v2923_v26 = vld [vmem:[#allocation10 + $0x300] sm:$0xf]  ;;  %v3807_v27 = vld [vmem:[#allocation10 + $0x30c] sm:$0xf0]  ;;  %v2796_v37 = vor.u32 %v3775_v24, %v2795_v23  ;;  %1363 = vmatpush.bf16.msra.mxu0 %v2540_v32  ;;  %v3757_v22 = vld [vmem:[#allocation10 + $0x184] sm:$0xf]  ;;  %v2608_v25 = vor.u32 %v3725_v18, %v2605_v19 }
  0x44   :  { %v3163_v28 = vld [vmem:[#allocation10 + $0x4e0] sm:$0xf]  ;;  %v3867_v29 = vld [vmem:[#allocation10 + $0x4ec] sm:$0xf0]  ;;  %v2924_v41 = vor.u32 %v3807_v27, %v2923_v26  ;;  %1376 = vmatpush.bf16.msra.mxu1 %v2668_v36  ;;  %v2733_v23 = vld [vmem:[#allocation10 + $0x190] sm:$0xf0] }
  0x45   :  { %v3291_v30 = vld [vmem:[#allocation10 + $0x5e0] sm:$0xf]  ;;  %v3899_v31 = vld [vmem:[#allocation10 + $0x5ec] sm:$0xf0]  ;;  %v3164_v42 = vor.u32 %v3867_v29, %v3163_v28  ;;  %1389 = vmatpush.bf16.msra.mxu2 %v2796_v37  ;;  %v2736_v33 = vor.u32 %v3757_v22, %v2733_v23  ;;  %v2717_v36 = vld [vmem:[#allocation10 + $0x170] sm:$0xf0] }
  0x46   :  { %v154_v35 = vld [vmem:[#allocation2 + $0x10] sm:$0xff]  ;;  %v3307_v38 = vld [vmem:[#allocation10 + $0x600] sm:$0xf]  ;;  %v3292_v46 = vor.u32 %v3899_v31, %v3291_v30  ;;  %1402 = vmatpush.bf16.msra.mxu3 %v2924_v41  ;;  %v3721_v30 = vld [vmem:[#allocation10 + $0x64] sm:$0xf] }
  0x47   :  { %v3903_v39 = vld [vmem:[#allocation10 + $0x60c] sm:$0xf0]  ;;  %v152_v40 = vld [vmem:[#allocation2] sm:$0xff]  ;;  %v4348_v51 = vpack.c.bf16 %v154_v35, %v154_v35  ;;  %1408 = vmatpush.bf16.msrb.mxu0 %v3164_v42  ;;  %1377 = vmatmul.bf16.vlgmr.msra.gmra.mxu1 %v4356_v7  ;;  %v2589_v31 = vld [vmem:[#allocation10 + $0x70] sm:$0xf0] }
  0x48   :  { %v3147_v48 = vld [vmem:[#allocation10 + $0x4c0] sm:$0xf]  ;;  %v3863_v49 = vld [vmem:[#allocation10 + $0x4cc] sm:$0xf0]  ;;  %v4350_v55 = vpack.c.bf16 %v152_v40, %v152_v40  ;;  %v3308_v56 = vor.u32 %v3903_v39, %v3307_v38  ;;  %1421 = vmatpush.bf16.msrb.mxu1 %v3292_v46  ;;  %v3753_v35 = vld [vmem:[#allocation10 + $0x164] sm:$0xf]  ;;  %v2592_v38 = vor.u32 %v3721_v30, %v2589_v31 }
  0x49   :  { %v3275_v50 = vld [vmem:[#allocation10 + $0x5c0] sm:$0xf]  ;;  %v3895_v52 = vld [vmem:[#allocation10 + $0x5cc] sm:$0xf0]  ;;  %v3148_v60 = vor.u32 %v3863_v49, %v3147_v48  ;;  %1390 = vmatmul.bf16.vlgmr.msra.gmra.mxu2 %v4348_v51  ;;  %1403 = vmatmul.bf16.vlgmr.msra.gmra.mxu3 %v4352_v57  ;;  %v2573_v44 = vld [vmem:[#allocation10 + $0x50] sm:$0xf0]  ;;  %v2720_v46 = vor.u32 %v3753_v35, %v2717_v36 }
  0x4a   :  { %1447 = vmatpush.bf16.msrb.mxu3 %v2656_v47  ;;  %v3276_v63 = vor.u32 %v3895_v52, %v3275_v50  ;;  %v3131_v1 = vld [vmem:[#allocation10 + $0x4a0] sm:$0xf]  ;;  %v3859_v2 = vld [vmem:[#allocation10 + $0x4ac] sm:$0xf0]  ;;  %1364 = vmatmul.bf16.vlgmr.msra.gmra.mxu0 %v4350_v55  ;;  %v3749_v48 = vld [vmem:[#allocation10 + $0x144] sm:$0xf]  ;;  %v2576_v52 = vor.u32 %v3717_v43, %v2573_v44 }
  0x4b   :  { %v3259_v3 = vld [vmem:[#allocation10 + $0x5a0] sm:$0xf]  ;;  %v3891_v4 = vld [vmem:[#allocation10 + $0x5ac] sm:$0xf0]  ;;  %1441 = vmatpush.bf16.msrb.mxu2 %v3308_v56  ;;  %1409 = vmatpush.bf16.msrb.mxu0 %v3148_v60  ;;  %v3132_v9 = vor.u32 %v3859_v2, %v3131_v1  ;;  %v2701_v49 = vld [vmem:[#allocation10 + $0x150] sm:$0xf0] }
  0x4c   :  { %1422 = vmatpush.bf16.msrb.mxu1 %v3276_v63  ;;  %v3260_v12 = vor.u32 %v3891_v4, %v3259_v3  ;;  %v3115_v14 = vld [vmem:[#allocation10 + $0x480] sm:$0xf]  ;;  %v3855_v15 = vld [vmem:[#allocation10 + $0x48c] sm:$0xf0]  ;;  %v2557_v60 = vld [vmem:[#allocation10 + $0x30] sm:$0xf0]  ;;  %v2704_v61 = vor.u32 %v3749_v48, %v2701_v49 }
  0x4d   :  { %v3243_v16 = vld [vmem:[#allocation10 + $0x580] sm:$0xf]  ;;  %v3887_v17 = vld [vmem:[#allocation10 + $0x58c] sm:$0xf0]  ;;  %v3116_v21 = vor.u32 %v3855_v15, %v3115_v14  ;;  %v3745_v63 = vld [vmem:[#allocation10 + $0x124] sm:$0xf] }
  0x4e   :  { %1448 = vmatpush.bf16.msrb.mxu3 %v2640_v0  ;;  %v3244_v24 = vor.u32 %v3887_v17, %v3243_v16  ;;  %v3099_v26 = vld [vmem:[#allocation10 + $0x460] sm:$0xf]  ;;  %v3851_v27 = vld [vmem:[#allocation10 + $0x46c] sm:$0xf0]  ;;  %v2685_v0 = vld [vmem:[#allocation10 + $0x130] sm:$0xf0] }
  0x4f   :  { %1460 = vmatpush.bf16.msra.mxu2 %v2784_v59  ;;  %1410 = vmatpush.bf16.msrb.mxu0 %v3132_v9  ;;  %v3227_v28 = vld [vmem:[#allocation10 + $0x560] sm:$0xf]  ;;  %v3883_v29 = vld [vmem:[#allocation10 + $0x56c] sm:$0xf0]  ;;  %v3100_v34 = vor.u32 %v3851_v27, %v3099_v26  ;;  %v3713_v59 = vld [vmem:[#allocation10 + $0x24] sm:$0xf]  ;;  %v2688_v14 = vor.u32 %v3745_v63, %v2685_v0 }
  0x50   :  { %1423 = vmatpush.bf16.msrb.mxu1 %v3260_v12  ;;  %v158_v32 = vld [vmem:[#allocation2 + $0x30] sm:$0xff]  ;;  %v3228_v37 = vor.u32 %v3883_v29, %v3227_v28  ;;  %v3083_v39 = vld [vmem:[#allocation10 + $0x440] sm:$0xf]  ;;  %v2560_v3 = vor.u32 %v3713_v59, %v2557_v60  ;;  %v3801_v10 = vld [vmem:[#allocation10 + $0x2e4] sm:$0xf] }
  0x51   :  { %v3847_v40 = vld [vmem:[#allocation10 + $0x44c] sm:$0xf0]  ;;  %v3211_v41 = vld [vmem:[#allocation10 + $0x540] sm:$0xf]  ;;  %v4360_v45 = vpack.c.bf16 %v158_v32, %v158_v32  ;;  %v2541_v9 = vld [vmem:[#allocation10 + $0x10] sm:$0xf0] }
  0x52   :  { %1449 = vmatpush.bf16.msrb.mxu3 %v2624_v13  ;;  %v3879_v42 = vld [vmem:[#allocation10 + $0x54c] sm:$0xf0]  ;;  %v3084_v47 = vor.u32 %v3847_v40, %v3083_v39  ;;  %v3067_v53 = vld [vmem:[#allocation10 + $0x420] sm:$0xf]  ;;  %v2909_v11 = vld [vmem:[#allocation10 + $0x2f0] sm:$0xf0] }
  0x53   :  { %1461 = vmatpush.bf16.msra.mxu2 %v2768_v8  ;;  %1411 = vmatpush.bf16.msrb.mxu0 %v3116_v21  ;;  %v3212_v50 = vor.u32 %v3879_v42, %v3211_v41  ;;  %v3843_v54 = vld [vmem:[#allocation10 + $0x42c] sm:$0xf0]  ;;  %v3195_v56 = vld [vmem:[#allocation10 + $0x520] sm:$0xf]  ;;  %v3709_v8 = vld [vmem:[#allocation10 + $0x4] sm:$0xf] }
  0x54   :  { %1424 = vmatpush.bf16.msrb.mxu1 %v3244_v24  ;;  %v3875_v58 = vld [vmem:[#allocation10 + $0x52c] sm:$0xf0]  ;;  %v3068_v62 = vor.u32 %v3843_v54, %v3067_v53  ;;  %v3051_v1 = vld [vmem:[#allocation10 + $0x400] sm:$0xf]  ;;  %v3833_v12 = vld [vmem:[#allocation10 + $0x3e4] sm:$0xf]  ;;  %v2912_v24 = vor.u32 %v3801_v10, %v2909_v11 }
  0x55   :  { %v3196_v2 = vor.u32 %v3875_v58, %v3195_v56  ;;  %v3839_v4 = vld [vmem:[#allocation10 + $0x40c] sm:$0xf0]  ;;  %v3179_v5 = vld [vmem:[#allocation10 + $0x500] sm:$0xf]  ;;  %v3037_v13 = vld [vmem:[#allocation10 + $0x3f0] sm:$0xf0] }
  0x56   :  { %1450 = vmatpush.bf16.msrb.mxu3 %v2608_v25  ;;  %v3871_v6 = vld [vmem:[#allocation10 + $0x50c] sm:$0xf0]  ;;  %v3052_v15 = vor.u32 %v3839_v4, %v3051_v1  ;;  %v3865_v16 = vld [vmem:[#allocation10 + $0x4e4] sm:$0xf]  ;;  %v3165_v17 = vld [vmem:[#allocation10 + $0x4f0] sm:$0xf0]  ;;  %v3040_v25 = vor.u32 %v3833_v12, %v3037_v13 }
  0x57   :  { %1462 = vmatpush.bf16.msra.mxu2 %v2752_v20  ;;  %1412 = vmatpush.bf16.msrb.mxu0 %v3100_v34  ;;  %v156_v18 = vld [vmem:[#allocation2 + $0x20] sm:$0xff]  ;;  %v3180_v19 = vor.u32 %v3871_v6, %v3179_v5  ;;  %v2544_v20 = vor.u32 %v3709_v8, %v2541_v9  ;;  %v2669_v22 = vld [vmem:[#allocation10 + $0x110] sm:$0xf0]  ;;  %v157_v23 = vld [vmem:[#allocation2 + $0x28] sm:$0xff]  ;;  %v3168_v29 = vor.u32 %v3865_v16, %v3165_v17 }
  0x58   :  { %1425 = vmatpush.bf16.msrb.mxu1 %v3228_v37  ;;  %v3741_v21 = vld [vmem:[#allocation10 + $0x104] sm:$0xf]  ;;  %v3293_v27 = vld [vmem:[#allocation10 + $0x5f0] sm:$0xf0]  ;;  %v4364_v30 = vpack.c.bf16 %v156_v18, %v156_v18  ;;  %v4366_v35 = vpack.c.bf16 %v157_v23, %v157_v23 }
  0x59   :  { %3321 = vmatmul.msk.bf16.vlgmr.msrb.gmra.mxu2 %vm1352_vm0, %v4360_v45  ;;  %v3897_v26 = vld [vmem:[#allocation10 + $0x5e4] sm:$0xf]  ;;  %v2893_v31 = vld [vmem:[#allocation10 + $0x2d0] sm:$0xf0]  ;;  %v2672_v34 = vor.u32 %v3741_v21, %v2669_v22 }
  0x5a   :  { %1451 = vmatpush.bf16.msrb.mxu3 %v2592_v38  ;;  %v3797_v28 = vld [vmem:[#allocation10 + $0x2c4] sm:$0xf]  ;;  %v3149_v37 = vld [vmem:[#allocation10 + $0x4d0] sm:$0xf0]  ;;  %v3296_v38 = vor.u32 %v3897_v26, %v3293_v27 }
  0x5b   :  { %1463 = vmatpush.bf16.msra.mxu2 %v2736_v33  ;;  %1413 = vmatpush.bf16.msrb.mxu0 %v3084_v47  ;;  %v3829_v32 = vld [vmem:[#allocation10 + $0x3c4] sm:$0xf]  ;;  %v3021_v33 = vld [vmem:[#allocation10 + $0x3d0] sm:$0xf0]  ;;  %v2896_v39 = vor.u32 %v3797_v28, %v2893_v31 }
  0x5c   :  { %1426 = vmatpush.bf16.msrb.mxu1 %v3212_v50  ;;  %v3861_v36 = vld [vmem:[#allocation10 + $0x4c4] sm:$0xf]  ;;  %v3024_v40 = vor.u32 %v3829_v32, %v3021_v33  ;;  %v3277_v42 = vld [vmem:[#allocation10 + $0x5d0] sm:$0xf0] }
  0x5d   :  { %v3893_v41 = vld [vmem:[#allocation10 + $0x5c4] sm:$0xf]  ;;  %v3152_v44 = vor.u32 %v3861_v36, %v3149_v37  ;;  %v3005_v48 = vld [vmem:[#allocation10 + $0x3b0] sm:$0xf0] }
  0x5e   :  { %1452 = vmatpush.bf16.msrb.mxu3 %v2576_v52  ;;  %v3793_v43 = vld [vmem:[#allocation10 + $0x2a4] sm:$0xf]  ;;  %v3133_v50 = vld [vmem:[#allocation10 + $0x4b0] sm:$0xf0]  ;;  %v3280_v52 = vor.u32 %v3893_v41, %v3277_v42 }
  0x5f   :  { %1464 = vmatpush.bf16.msra.mxu2 %v2720_v46  ;;  %1414 = vmatpush.bf16.msrb.mxu0 %v3068_v62  ;;  %v2877_v46 = vld [vmem:[#allocation10 + $0x2b0] sm:$0xf0]  ;;  %v3825_v47 = vld [vmem:[#allocation10 + $0x3a4] sm:$0xf] }
  0x60   :  { %1427 = vmatpush.bf16.msrb.mxu1 %v3196_v2  ;;  %v3857_v49 = vld [vmem:[#allocation10 + $0x4a4] sm:$0xf]  ;;  %v2880_v53 = vor.u32 %v3793_v43, %v2877_v46  ;;  %v3008_v54 = vor.u32 %v3825_v47, %v3005_v48  ;;  %v3261_v58 = vld [vmem:[#allocation10 + $0x5b0] sm:$0xf0] }
  0x61   :  { %v3889_v56 = vld [vmem:[#allocation10 + $0x5a4] sm:$0xf]  ;;  %v3136_v60 = vor.u32 %v3857_v49, %v3133_v50  ;;  %v2989_v63 = vld [vmem:[#allocation10 + $0x390] sm:$0xf0] }
  0x62   :  { %1453 = vmatpush.bf16.msrb.mxu3 %v2560_v3  ;;  %v3789_v59 = vld [vmem:[#allocation10 + $0x284] sm:$0xf]  ;;  %v3117_v1 = vld [vmem:[#allocation10 + $0x490] sm:$0xf0]  ;;  %v3264_v2 = vor.u32 %v3889_v56, %v3261_v58  ;;  %v2659_v56 = vld [vmem:[#allocation10 + $0xe8] sm:$0xf] }
  0x63   :  { %1465 = vmatpush.bf16.msra.mxu2 %v2704_v61  ;;  %1415 = vmatpush.bf16.msrb.mxu0 %v3052_v15  ;;  %v2861_v61 = vld [vmem:[#allocation10 + $0x290] sm:$0xf0]  ;;  %v3821_v62 = vld [vmem:[#allocation10 + $0x384] sm:$0xf]  ;;  %v3740_v58 = vld [vmem:[#allocation10 + $0xf4] sm:$0xf0] }
  0x64   :  { %1428 = vmatpush.bf16.msrb.mxu1 %v3180_v19  ;;  %v3853_v0 = vld [vmem:[#allocation10 + $0x484] sm:$0xf]  ;;  %v2864_v3 = vor.u32 %v3789_v59, %v2861_v61  ;;  %v2992_v4 = vor.u32 %v3821_v62, %v2989_v63  ;;  %v3245_v6 = vld [vmem:[#allocation10 + $0x590] sm:$0xf0]  ;;  %v2915_v62 = vld [vmem:[#allocation10 + $0x2e8] sm:$0xf] }
  0x65   :  { %v3885_v5 = vld [vmem:[#allocation10 + $0x584] sm:$0xf]  ;;  %v3120_v9 = vor.u32 %v3853_v0, %v3117_v1  ;;  %v2845_v10 = vld [vmem:[#allocation10 + $0x270] sm:$0xf0]  ;;  %v3804_v63 = vld [vmem:[#allocation10 + $0x2f4] sm:$0xf0] }
  0x66   :  { %1454 = vmatpush.bf16.msrb.mxu3 %v2544_v20  ;;  %1416 = vmatmul.bf16.vlgmr.msrb.gmra.mxu0 %v4364_v30  ;;  %v3785_v8 = vld [vmem:[#allocation10 + $0x264] sm:$0xf]  ;;  %v2973_v12 = vld [vmem:[#allocation10 + $0x370] sm:$0xf0]  ;;  %v3248_v15 = vor.u32 %v3885_v5, %v3245_v6  ;;  %v2660_v5 = vor.u32 %v3740_v58, %v2659_v56  ;;  %v3043_v6 = vld [vmem:[#allocation10 + $0x3e8] sm:$0xf] }
  0x67   :  { %1466 = vmatpush.bf16.msra.mxu2 %v2688_v14  ;;  %1473 = vmatpush.bf16.msra.mxu0 %v2912_v24  ;;  %v3817_v11 = vld [vmem:[#allocation10 + $0x364] sm:$0xf]  ;;  %v3101_v14 = vld [vmem:[#allocation10 + $0x470] sm:$0xf0]  ;;  %v2848_v16 = vor.u32 %v3785_v8, %v2845_v10  ;;  %v3836_v8 = vld [vmem:[#allocation10 + $0x3f4] sm:$0xf0] }
  0x68   :  { %1486 = vmatpush.bf16.msra.mxu1 %v3040_v25  ;;  %v3849_v13 = vld [vmem:[#allocation10 + $0x464] sm:$0xf]  ;;  %v2976_v17 = vor.u32 %v3817_v11, %v2973_v12  ;;  %v3229_v19 = vld [vmem:[#allocation10 + $0x570] sm:$0xf0]  ;;  %v2787_v10 = vld [vmem:[#allocation10 + $0x1e8] sm:$0xf]  ;;  %v2916_v12 = vor.u32 %v3804_v63, %v2915_v62 }
  0x69   :  { %1429 = vmatmul.bf16.vlgmr.msrb.gmra.mxu1 %v4366_v35  ;;  %1455 = vmatmul.bf16.vlgmr.msrb.gmra.mxu3 %v4350_v55  ;;  %v3881_v18 = vld [vmem:[#allocation10 + $0x564] sm:$0xf]  ;;  %v3104_v21 = vor.u32 %v3849_v13, %v3101_v14  ;;  %v2829_v22 = vld [vmem:[#allocation10 + $0x250] sm:$0xf0]  ;;  %v3772_v11 = vld [vmem:[#allocation10 + $0x1f4] sm:$0xf0] }
  0x6a   :  { %1499 = vmatpush.bf16.msra.mxu3 %v3168_v29  ;;  %v3781_v20 = vld [vmem:[#allocation10 + $0x244] sm:$0xf]  ;;  %v2957_v24 = vld [vmem:[#allocation10 + $0x350] sm:$0xf0]  ;;  %v3232_v27 = vor.u32 %v3881_v18, %v3229_v19  ;;  %v2643_v14 = vld [vmem:[#allocation10 + $0xc8] sm:$0xf]  ;;  %v2788_v19 = vor.u32 %v3772_v11, %v2787_v10 }
  0x6b   :  { %1467 = vmatpush.bf16.msra.mxu2 %v2672_v34  ;;  %1474 = vmatpush.bf16.msra.mxu0 %v2896_v39  ;;  %v3813_v23 = vld [vmem:[#allocation10 + $0x344] sm:$0xf]  ;;  %v3085_v26 = vld [vmem:[#allocation10 + $0x450] sm:$0xf0]  ;;  %v2832_v28 = vor.u32 %v3781_v20, %v2829_v22  ;;  %v3800_v18 = vld [vmem:[#allocation10 + $0x2d4] sm:$0xf0] }
  0x6c   :  { %1487 = vmatpush.bf16.msra.mxu1 %v3024_v40  ;;  %v3845_v25 = vld [vmem:[#allocation10 + $0x444] sm:$0xf]  ;;  %v2960_v29 = vor.u32 %v3813_v23, %v2957_v24  ;;  %v3213_v32 = vld [vmem:[#allocation10 + $0x550] sm:$0xf0]  ;;  %v3027_v20 = vld [vmem:[#allocation10 + $0x3c8] sm:$0xf] }
  0x6d   :  { %v3877_v31 = vld [vmem:[#allocation10 + $0x544] sm:$0xf]  ;;  %v3088_v34 = vor.u32 %v3845_v25, %v3085_v26  ;;  %v2813_v36 = vld [vmem:[#allocation10 + $0x230] sm:$0xf0]  ;;  %v2771_v23 = vld [vmem:[#allocation10 + $0x1c8] sm:$0xf] }
  0x6e   :  { %1500 = vmatpush.bf16.msra.mxu3 %v3152_v44  ;;  %1468 = vmatmul.bf16.vlgmr.msra.gmra.mxu2 %v4356_v7  ;;  %v3777_v33 = vld [vmem:[#allocation10 + $0x224] sm:$0xf]  ;;  %v3069_v40 = vld [vmem:[#allocation10 + $0x430] sm:$0xf0]  ;;  %v3216_v41 = vor.u32 %v3877_v31, %v3213_v32  ;;  %v3768_v24 = vld [vmem:[#allocation10 + $0x1d4] sm:$0xf0] }
  0x6f   :  { %1512 = vmatpush.bf16.msrb.mxu2 %v3296_v38  ;;  %1475 = vmatpush.bf16.msra.mxu0 %v2880_v53  ;;  %v3809_v37 = vld [vmem:[#allocation10 + $0x324] sm:$0xf]  ;;  %v2941_v38 = vld [vmem:[#allocation10 + $0x330] sm:$0xf0]  ;;  %v2816_v44 = vor.u32 %v3777_v33, %v2813_v36  ;;  %v2627_v26 = vld [vmem:[#allocation10 + $0xa8] sm:$0xf]  ;;  %v2772_v32 = vor.u32 %v3768_v24, %v2771_v23 }
  0x70   :  { %1488 = vmatpush.bf16.msra.mxu1 %v3008_v54  ;;  %v3841_v39 = vld [vmem:[#allocation10 + $0x424] sm:$0xf]  ;;  %v3197_v43 = vld [vmem:[#allocation10 + $0x530] sm:$0xf0]  ;;  %v2944_v46 = vor.u32 %v3809_v37, %v2941_v38  ;;  %v3796_v31 = vld [vmem:[#allocation10 + $0x2b4] sm:$0xf0] }
  0x71   :  { %v3873_v42 = vld [vmem:[#allocation10 + $0x524] sm:$0xf]  ;;  %v2797_v48 = vld [vmem:[#allocation10 + $0x210] sm:$0xf0]  ;;  %v3072_v50 = vor.u32 %v3841_v39, %v3069_v40  ;;  %v3011_v33 = vld [vmem:[#allocation10 + $0x3a8] sm:$0xf] }
  0x72   :  { %1501 = vmatpush.bf16.msra.mxu3 %v3136_v60  ;;  %v3773_v47 = vld [vmem:[#allocation10 + $0x204] sm:$0xf]  ;;  %v3053_v54 = vld [vmem:[#allocation10 + $0x410] sm:$0xf0]  ;;  %v3200_v60 = vor.u32 %v3873_v42, %v3197_v43  ;;  %v2755_v37 = vld [vmem:[#allocation10 + $0x1a8] sm:$0xf] }
  0x73   :  { %1513 = vmatpush.bf16.msrb.mxu2 %v3280_v52  ;;  %1476 = vmatpush.bf16.msra.mxu0 %v2864_v3  ;;  %v3805_v49 = vld [vmem:[#allocation10 + $0x304] sm:$0xf]  ;;  %v2925_v52 = vld [vmem:[#allocation10 + $0x310] sm:$0xf0]  ;;  %v2800_v0 = vor.u32 %v3773_v47, %v2797_v48  ;;  %v3764_v38 = vld [vmem:[#allocation10 + $0x1b4] sm:$0xf0] }
  0x74   :  { %1489 = vmatpush.bf16.msra.mxu1 %v2992_v4  ;;  %v3837_v53 = vld [vmem:[#allocation10 + $0x404] sm:$0xf]  ;;  %v3309_v61 = vld [vmem:[#allocation10 + $0x610] sm:$0xf0]  ;;  %v2928_v1 = vor.u32 %v3805_v49, %v2925_v52  ;;  %v2611_v40 = vld [vmem:[#allocation10 + $0x88] sm:$0xf] }
  0x75   :  { %v3901_v59 = vld [vmem:[#allocation10 + $0x604] sm:$0xf]  ;;  %v3181_v3 = vld [vmem:[#allocation10 + $0x510] sm:$0xf0]  ;;  %v3056_v4 = vor.u32 %v3837_v53, %v3053_v54  ;;  %v2867_v43 = vld [vmem:[#allocation10 + $0x288] sm:$0xf] }
  0x76   :  { %1502 = vmatpush.bf16.msra.mxu3 %v3120_v9  ;;  %v3312_v9 = vor.u32 %v3901_v59, %v3309_v61  ;;  %v2995_v47 = vld [vmem:[#allocation10 + $0x388] sm:$0xf]  ;;  %v3824_v48 = vld [vmem:[#allocation10 + $0x394] sm:$0xf0] }
  0x77   :  { %1514 = vmatpush.bf16.msrb.mxu2 %v3264_v2  ;;  %1477 = vmatpush.bf16.msra.mxu0 %v2848_v16  ;;  %v3869_v2 = vld [vmem:[#allocation10 + $0x504] sm:$0xf]  ;;  %v3044_v16 = vor.u32 %v3836_v8, %v3043_v6  ;;  %v3760_v52 = vld [vmem:[#allocation10 + $0x194] sm:$0xf0]  ;;  %v2595_v54 = vld [vmem:[#allocation10 + $0x68] sm:$0xf]  ;;  %v2996_v58 = vor.u32 %v3824_v48, %v2995_v47 }
  0x78   :  { %1490 = vmatpush.bf16.msra.mxu1 %v2976_v17  ;;  %v3184_v13 = vor.u32 %v3869_v2, %v3181_v3  ;;  %v2899_v17 = vld [vmem:[#allocation10 + $0x2c8] sm:$0xf]  ;;  %v3724_v56 = vld [vmem:[#allocation10 + $0x74] sm:$0xf0]  ;;  %v3738_v47 = vld [vmem:[#allocation10 + $0xec] sm:$0xf] }
  0x79   :  { %v2900_v25 = vor.u32 %v3800_v18, %v2899_v17  ;;  %v2851_v59 = vld [vmem:[#allocation10 + $0x268] sm:$0xf]  ;;  %v3820_v63 = vld [vmem:[#allocation10 + $0x374] sm:$0xf0]  ;;  %v2661_v48 = vld [vmem:[#allocation10 + $0xf8] sm:$0xf0] }
  0x7a   :  { %1503 = vmatpush.bf16.msra.mxu3 %v3104_v21  ;;  %v3832_v21 = vld [vmem:[#allocation10 + $0x3d4] sm:$0xf0]  ;;  %v2979_v62 = vld [vmem:[#allocation10 + $0x368] sm:$0xf] }
  0x7b   :  { %1515 = vmatpush.bf16.msrb.mxu2 %v3248_v15  ;;  %1478 = vmatpush.bf16.msra.mxu0 %v2832_v28  ;;  %v3736_v15 = vld [vmem:[#allocation10 + $0xd4] sm:$0xf0]  ;;  %v3028_v28 = vor.u32 %v3832_v21, %v3027_v20  ;;  %v2980_v6 = vor.u32 %v3820_v63, %v2979_v62  ;;  %v2835_v8 = vld [vmem:[#allocation10 + $0x248] sm:$0xf]  ;;  %v2664_v63 = vor.u32 %v3738_v47, %v2661_v48 }
  0x7c   :  { %1491 = vmatpush.bf16.msra.mxu1 %v2960_v29  ;;  %v2644_v22 = vor.u32 %v3736_v15, %v2643_v14  ;;  %v2883_v29 = vld [vmem:[#allocation10 + $0x2a8] sm:$0xf]  ;;  %v3756_v2 = vld [vmem:[#allocation10 + $0x174] sm:$0xf0] }
  0x7d   :  { %v2884_v39 = vor.u32 %v3796_v31, %v2883_v29  ;;  %v2963_v11 = vld [vmem:[#allocation10 + $0x348] sm:$0xf]  ;;  %v3752_v15 = vld [vmem:[#allocation10 + $0x154] sm:$0xf0] }
  0x7e   :  { %1504 = vmatpush.bf16.msra.mxu3 %v3088_v34  ;;  %v3828_v34 = vld [vmem:[#allocation10 + $0x3b4] sm:$0xf0]  ;;  %v2707_v14 = vld [vmem:[#allocation10 + $0x148] sm:$0xf] }
  0x7f   :  { %1516 = vmatpush.bf16.msrb.mxu2 %v3232_v27  ;;  %1479 = vmatpush.bf16.msra.mxu0 %v2816_v44  ;;  %v3732_v27 = vld [vmem:[#allocation10 + $0xb4] sm:$0xf0]  ;;  %v3012_v42 = vor.u32 %v3828_v34, %v3011_v33  ;;  %v2563_v17 = vld [vmem:[#allocation10 + $0x28] sm:$0xf] }
  0x80   :  { %1492 = vmatpush.bf16.msra.mxu1 %v2944_v46  ;;  %v2628_v36 = vor.u32 %v3732_v27, %v2627_v26  ;;  %v3792_v44 = vld [vmem:[#allocation10 + $0x294] sm:$0xf0]  ;;  %v2756_v46 = vor.u32 %v3764_v38, %v2755_v37  ;;  %v2819_v20 = vld [vmem:[#allocation10 + $0x228] sm:$0xf] }
  0x81   :  { %v2868_v53 = vor.u32 %v3792_v44, %v2867_v43  ;;  %v3716_v18 = vld [vmem:[#allocation10 + $0x34] sm:$0xf0]  ;;  %v2947_v23 = vld [vmem:[#allocation10 + $0x328] sm:$0xf] }
  0x82   :  { %1505 = vmatpush.bf16.msra.mxu3 %v3072_v50  ;;  %v2739_v50 = vld [vmem:[#allocation10 + $0x188] sm:$0xf]  ;;  %v3780_v21 = vld [vmem:[#allocation10 + $0x234] sm:$0xf0] }
  0x83   :  { %1517 = vmatpush.bf16.msrb.mxu2 %v3216_v41  ;;  %1480 = vmatpush.bf16.msra.mxu0 %v2800_v0  ;;  %v3728_v41 = vld [vmem:[#allocation10 + $0x94] sm:$0xf0]  ;;  %v2740_v61 = vor.u32 %v3760_v52, %v2739_v50  ;;  %v2596_v0 = vor.u32 %v3724_v56, %v2595_v54  ;;  %v2691_v26 = vld [vmem:[#allocation10 + $0x128] sm:$0xf]  ;;  %v2820_v29 = vor.u32 %v3780_v21, %v2819_v20 }
  0x84   :  { %1493 = vmatpush.bf16.msra.mxu1 %v2928_v1  ;;  %v2612_v49 = vor.u32 %v3728_v41, %v2611_v40  ;;  %v2723_v1 = vld [vmem:[#allocation10 + $0x168] sm:$0xf]  ;;  %v3812_v24 = vld [vmem:[#allocation10 + $0x334] sm:$0xf0] }
  0x85   :  { %v2724_v10 = vor.u32 %v3756_v2, %v2723_v1  ;;  %v3748_v27 = vld [vmem:[#allocation10 + $0x134] sm:$0xf0]  ;;  %v2948_v34 = vor.u32 %v3812_v24, %v2947_v23  ;;  %v2803_v37 = vld [vmem:[#allocation10 + $0x208] sm:$0xf]  ;;  %v3734_v1 = vld [vmem:[#allocation10 + $0xcc] sm:$0xf] }
  0x86   :  { %1506 = vmatpush.bf16.msra.mxu3 %v3056_v4  ;;  %1481 = vmatmul.bf16.vlgmr.msra.gmra.mxu0 %v4348_v51  ;;  %v2579_v4 = vld [vmem:[#allocation10 + $0x48] sm:$0xf]  ;;  %v3712_v31 = vld [vmem:[#allocation10 + $0x14] sm:$0xf0]  ;;  %v2692_v40 = vor.u32 %v3748_v27, %v2691_v26  ;;  %v2645_v2 = vld [vmem:[#allocation10 + $0xd8] sm:$0xf0] }
  0x87   :  { %1518 = vmatpush.bf16.msrb.mxu2 %v3200_v60  ;;  %1564 = vmatpush.bf16.msrb.mxu0 %v2916_v12  ;;  %v3788_v60 = vld [vmem:[#allocation10 + $0x274] sm:$0xf0]  ;;  %v3299_v52 = vld [vmem:[#allocation10 + $0x5e8] sm:$0xf]  ;;  %v2757_v23 = vld [vmem:[#allocation10 + $0x1b8] sm:$0xf0] }
  0x88   :  { %1538 = vmatpush.bf16.msrb.mxu1 %v2660_v5  ;;  %v2852_v3 = vor.u32 %v3788_v60, %v2851_v59  ;;  %v3720_v5 = vld [vmem:[#allocation10 + $0x54] sm:$0xf0]  ;;  %v3155_v54 = vld [vmem:[#allocation10 + $0x4c8] sm:$0xf]  ;;  %v3770_v60 = vld [vmem:[#allocation10 + $0x1ec] sm:$0xf] }
  0x89   :  { %1507 = vmatmul.bf16.vlgmr.msra.gmra.mxu3 %v4364_v30  ;;  %1494 = vmatmul.bf16.vlgmr.msra.gmra.mxu1 %v4352_v57  ;;  %v3816_v12 = vld [vmem:[#allocation10 + $0x354] sm:$0xf0]  ;;  %v3123_v20 = vld [vmem:[#allocation10 + $0x488] sm:$0xf]  ;;  %v3726_v26 = vld [vmem:[#allocation10 + $0x8c] sm:$0xf] }
  0x8a   :  { %1532 = vmatpush.bf16.msrb.mxu3 %v3312_v9  ;;  %v3784_v9 = vld [vmem:[#allocation10 + $0x254] sm:$0xf0]  ;;  %v2613_v27 = vld [vmem:[#allocation10 + $0x98] sm:$0xf0]  ;;  %v3091_v47 = vld [vmem:[#allocation10 + $0x448] sm:$0xf] }
  0x8b   :  { %1519 = vmatpush.bf16.msrb.mxu2 %v3184_v13  ;;  %1565 = vmatpush.bf16.msrb.mxu0 %v2900_v25  ;;  %v2580_v13 = vor.u32 %v3720_v5, %v2579_v4  ;;  %v2564_v25 = vor.u32 %v3716_v18, %v2563_v17  ;;  %v3868_v33 = vld [vmem:[#allocation10 + $0x4f4] sm:$0xf0]  ;;  %v3283_v5 = vld [vmem:[#allocation10 + $0x5c8] sm:$0xf] }
  0x8c   :  { %1539 = vmatpush.bf16.msrb.mxu1 %v2644_v22  ;;  %v2708_v22 = vor.u32 %v3752_v15, %v2707_v14  ;;  %v3776_v38 = vld [vmem:[#allocation10 + $0x214] sm:$0xf0]  ;;  %v3730_v14 = vld [vmem:[#allocation10 + $0xac] sm:$0xf]  ;;  %v2629_v15 = vld [vmem:[#allocation10 + $0xb8] sm:$0xf0] }
  0x8d   :  { %v3808_v41 = vld [vmem:[#allocation10 + $0x314] sm:$0xf0]  ;;  %v2804_v50 = vor.u32 %v3776_v38, %v2803_v37  ;;  %v3267_v18 = vld [vmem:[#allocation10 + $0x5a8] sm:$0xf]  ;;  %v2632_v24 = vor.u32 %v3730_v14, %v2629_v15  ;;  %v2741_v37 = vld [vmem:[#allocation10 + $0x198] sm:$0xf0]  ;;  %v2616_v38 = vor.u32 %v3726_v26, %v2613_v27 }
  0x8e   :  { %1551 = vmatpush.bf16.msra.mxu3 %v2788_v19  ;;  %1520 = vmatmul.bf16.vlgmr.msrb.gmra.mxu2 %v4366_v35  ;;  %v2964_v19 = vor.u32 %v3816_v12, %v2963_v11  ;;  %v3904_v43 = vld [vmem:[#allocation10 + $0x614] sm:$0xf0]  ;;  %v2773_v11 = vld [vmem:[#allocation10 + $0x1d8] sm:$0xf0]  ;;  %v2648_v12 = vor.u32 %v3734_v1, %v2645_v2 }
  0x8f   :  { %1577 = vmatpush.bf16.msra.mxu2 %v3044_v16  ;;  %1566 = vmatpush.bf16.msrb.mxu0 %v2884_v39  ;;  %v2836_v16 = vor.u32 %v3784_v9, %v2835_v8  ;;  %v2931_v39 = vld [vmem:[#allocation10 + $0x308] sm:$0xf]  ;;  %v3860_v9 = vld [vmem:[#allocation10 + $0x4b4] sm:$0xf0]  ;;  %v2709_v1 = vld [vmem:[#allocation10 + $0x158] sm:$0xf0] }
  0x90   :  { %1540 = vmatpush.bf16.msrb.mxu1 %v2628_v36  ;;  %v2675_v36 = vld [vmem:[#allocation10 + $0x108] sm:$0xf]  ;;  %v2932_v56 = vor.u32 %v3808_v41, %v2931_v39  ;;  %v3856_v21 = vld [vmem:[#allocation10 + $0x494] sm:$0xf0]  ;;  %v2597_v41 = vld [vmem:[#allocation10 + $0x78] sm:$0xf0] }
  0x91   :  { %v3139_v8 = vld [vmem:[#allocation10 + $0x4a8] sm:$0xf]  ;;  %v3848_v48 = vld [vmem:[#allocation10 + $0x454] sm:$0xf0]  ;;  %v2693_v14 = vld [vmem:[#allocation10 + $0x138] sm:$0xf0] }
  0x92   :  { %1552 = vmatpush.bf16.msra.mxu3 %v2772_v32  ;;  %v3171_v32 = vld [vmem:[#allocation10 + $0x4e8] sm:$0xf]  ;;  %v3045_v26 = vld [vmem:[#allocation10 + $0x3f8] sm:$0xf0] }
  0x93   :  { %1578 = vmatpush.bf16.msra.mxu2 %v3028_v28  ;;  %1567 = vmatpush.bf16.msrb.mxu0 %v2868_v53  ;;  %v2547_v28 = vld [vmem:[#allocation10 + $0x8] sm:$0xf]  ;;  %v3900_v53 = vld [vmem:[#allocation10 + $0x5f4] sm:$0xf0] }
  0x94   :  { %1541 = vmatpush.bf16.msrb.mxu1 %v2612_v49  ;;  %v2548_v44 = vor.u32 %v3712_v31, %v2547_v28  ;;  %v3172_v49 = vor.u32 %v3868_v33, %v3171_v32  ;;  %v3124_v28 = vor.u32 %v3856_v21, %v3123_v20  ;;  %v3251_v31 = vld [vmem:[#allocation10 + $0x588] sm:$0xf]  ;;  %v3888_v32 = vld [vmem:[#allocation10 + $0x594] sm:$0xf0]  ;;  %v3710_v20 = vld [vmem:[#allocation10 + $0xc] sm:$0xf] }
  0x95   :  { %v3107_v33 = vld [vmem:[#allocation10 + $0x468] sm:$0xf]  ;;  %v3252_v39 = vor.u32 %v3888_v32, %v3251_v31  ;;  %v2549_v21 = vld [vmem:[#allocation10 + $0x18] sm:$0xf0]  ;;  %v3798_v31 = vld [vmem:[#allocation10 + $0x2cc] sm:$0xf] }
  0x96   :  { %1553 = vmatpush.bf16.msra.mxu3 %v2756_v46  ;;  %v3744_v46 = vld [vmem:[#allocation10 + $0x114] sm:$0xf0]  ;;  %v2552_v32 = vor.u32 %v3710_v20, %v2549_v21  ;;  %v3253_v20 = vld [vmem:[#allocation10 + $0x598] sm:$0xf0] }
  0x97   :  { %1579 = vmatpush.bf16.msra.mxu2 %v3012_v42  ;;  %1568 = vmatpush.bf16.msrb.mxu0 %v2852_v3  ;;  %v3315_v42 = vld [vmem:[#allocation10 + $0x608] sm:$0xf]  ;;  %v2676_v62 = vor.u32 %v3744_v46, %v2675_v36  ;;  %v3758_v36 = vld [vmem:[#allocation10 + $0x18c] sm:$0xf]  ;;  %v3884_v46 = vld [vmem:[#allocation10 + $0x574] sm:$0xf0] }
  0x98   :  { %1542 = vmatpush.bf16.msrb.mxu1 %v2596_v0  ;;  %v3316_v59 = vor.u32 %v3904_v43, %v3315_v42  ;;  %v3300_v0 = vor.u32 %v3900_v53, %v3299_v52  ;;  %v2744_v43 = vor.u32 %v3758_v36, %v2741_v37  ;;  %v2677_v36 = vld [vmem:[#allocation10 + $0x118] sm:$0xf0] }
  0x99   :  { %3322 = vmatmul.msk.bf16.vlgmr.msrb.gmra.mxu3 %vm1352_vm0, %v4360_v45 }
  0x9a   :  { %1554 = vmatpush.bf16.msra.mxu3 %v2740_v61  ;;  %v2789_v61 = vld [vmem:[#allocation10 + $0x1f8] sm:$0xf0] }
  0x9b   :  { %1580 = vmatpush.bf16.msra.mxu2 %v2996_v58  ;;  %1569 = vmatpush.bf16.msrb.mxu0 %v2836_v16  ;;  %v3864_v58 = vld [vmem:[#allocation10 + $0x4d4] sm:$0xf0]  ;;  %v2792_v4 = vor.u32 %v3770_v60, %v2789_v61  ;;  %v3140_v16 = vor.u32 %v3860_v9, %v3139_v8  ;;  %v3219_v60 = vld [vmem:[#allocation10 + $0x548] sm:$0xf] }
  0x9c   :  { %1543 = vmatpush.bf16.msrb.mxu1 %v2580_v13  ;;  %v3156_v3 = vor.u32 %v3864_v58, %v3155_v54  ;;  %v3718_v54 = vld [vmem:[#allocation10 + $0x4c] sm:$0xf]  ;;  %v3092_v58 = vor.u32 %v3848_v48, %v3091_v47  ;;  %v3880_v61 = vld [vmem:[#allocation10 + $0x554] sm:$0xf0]  ;;  %v3203_v9 = vld [vmem:[#allocation10 + $0x528] sm:$0xf] }
  0x9d   :  { %v3862_v47 = vld [vmem:[#allocation10 + $0x4cc] sm:$0xf]  ;;  %v3157_v48 = vld [vmem:[#allocation10 + $0x4d8] sm:$0xf0] }
  0x9e   :  { %1555 = vmatpush.bf16.msra.mxu3 %v2724_v10  ;;  %v3766_v10 = vld [vmem:[#allocation10 + $0x1cc] sm:$0xf] }
  0x9f   :  { %1581 = vmatpush.bf16.msra.mxu2 %v2980_v6  ;;  %1570 = vmatpush.bf16.msrb.mxu0 %v2820_v29  ;;  %v3896_v6 = vld [vmem:[#allocation10 + $0x5d4] sm:$0xf0]  ;;  %v2776_v17 = vor.u32 %v3766_v10, %v2773_v11  ;;  %v3059_v11 = vld [vmem:[#allocation10 + $0x408] sm:$0xf] }
  0xa0   :  { %1544 = vmatpush.bf16.msrb.mxu1 %v2564_v25  ;;  %v3284_v13 = vor.u32 %v3896_v6, %v3283_v5  ;;  %v2565_v5 = vld [vmem:[#allocation10 + $0x38] sm:$0xf0]  ;;  %v3876_v10 = vld [vmem:[#allocation10 + $0x534] sm:$0xf0] }
  0xa2   :  { %1556 = vmatpush.bf16.msra.mxu3 %v2708_v22  ;;  %v3762_v22 = vld [vmem:[#allocation10 + $0x1ac] sm:$0xf] }
  0xa3   :  { %1582 = vmatpush.bf16.msra.mxu2 %v2964_v19  ;;  %1571 = vmatpush.bf16.msrb.mxu0 %v2804_v50  ;;  %v3892_v19 = vld [vmem:[#allocation10 + $0x5b4] sm:$0xf0]  ;;  %v2760_v29 = vor.u32 %v3762_v22, %v2757_v23  ;;  %v2725_v50 = vld [vmem:[#allocation10 + $0x178] sm:$0xf0] }
  0xa4   :  { %1545 = vmatpush.bf16.msrb.mxu1 %v2548_v44  ;;  %v3268_v25 = vor.u32 %v3892_v19, %v3267_v18  ;;  %v3235_v44 = vld [vmem:[#allocation10 + $0x568] sm:$0xf]  ;;  %v3204_v18 = vor.u32 %v3876_v10, %v3203_v9  ;;  %v3822_v10 = vld [vmem:[#allocation10 + $0x38c] sm:$0xf] }
  0xa5   :  { %v3236_v53 = vor.u32 %v3884_v46, %v3235_v44  ;;  %v3187_v19 = vld [vmem:[#allocation10 + $0x508] sm:$0xf]  ;;  %v3029_v46 = vld [vmem:[#allocation10 + $0x3d8] sm:$0xf0] }
  0xa6   :  { %1557 = vmatpush.bf16.msra.mxu3 %v2692_v40  ;;  %1572 = vmatmul.bf16.vlgmr.msrb.gmra.mxu0 %v4348_v51  ;;  %v3722_v40 = vld [vmem:[#allocation10 + $0x6c] sm:$0xf] }
  0xa7   :  { %1583 = vmatpush.bf16.msra.mxu2 %v2948_v34  ;;  %1623 = vmatpush.bf16.msra.mxu0 %v3316_v59  ;;  %v3852_v34 = vld [vmem:[#allocation10 + $0x474] sm:$0xf0]  ;;  %v2600_v52 = vor.u32 %v3722_v40, %v2597_v41 }
  0xa8   :  { %1590 = vmatpush.bf16.msra.mxu1 %v3172_v49  ;;  %v3108_v42 = vor.u32 %v3852_v34, %v3107_v33  ;;  %v3754_v49 = vld [vmem:[#allocation10 + $0x16c] sm:$0xf]  ;;  %v2901_v33 = vld [vmem:[#allocation10 + $0x2d8] sm:$0xf0] }
  0xa9   :  { %1546 = vmatmul.bf16.vlgmr.msrb.gmra.mxu1 %v4350_v55  ;;  %v2728_v59 = vor.u32 %v3754_v49, %v2725_v50  ;;  %v3742_v34 = vld [vmem:[#allocation10 + $0x10c] sm:$0xf] }
  0xaa   :  { %1558 = vmatpush.bf16.msra.mxu3 %v2676_v62  ;;  %v3075_v62 = vld [vmem:[#allocation10 + $0x428] sm:$0xf]  ;;  %v2680_v44 = vor.u32 %v3742_v34, %v2677_v36  ;;  %v3794_v50 = vld [vmem:[#allocation10 + $0x2ac] sm:$0xf]  ;;  %v3237_v34 = vld [vmem:[#allocation10 + $0x578] sm:$0xf0] }
  0xab   :  { %1584 = vmatpush.bf16.msra.mxu2 %v2932_v56  ;;  %1642 = vmatpush.bf16.msrb.mxu0 %v2792_v4  ;;  %v2581_v56 = vld [vmem:[#allocation10 + $0x58] sm:$0xf0]  ;;  %v3714_v4 = vld [vmem:[#allocation10 + $0x2c] sm:$0xf] }
  0xac   :  { %1591 = vmatpush.bf16.msra.mxu1 %v3156_v3  ;;  %v2584_v2 = vor.u32 %v3718_v54, %v2581_v56  ;;  %v3220_v3 = vor.u32 %v3880_v61, %v3219_v60  ;;  %v2568_v15 = vor.u32 %v3714_v4, %v2565_v5  ;;  %v3285_v54 = vld [vmem:[#allocation10 + $0x5d8] sm:$0xf0]  ;;  %v4388_v60 = vld [vmem:[%s4453_s5] sm:$0xf]  ;;  %v3890_v4 = vld [vmem:[#allocation10 + $0x5ac] sm:$0xf] }
  0xad   :  { %1559 = vmatmul.bf16.vlgmr.msra.gmra.mxu3 %v4356_v7  ;;  %v3269_v5 = vld [vmem:[#allocation10 + $0x5b8] sm:$0xf0] }
  0xae   :  { %1603 = vmatpush.bf16.msrb.mxu3 %v3300_v0  ;;  %1585 = vmatmul.bf16.vlgmr.msra.gmra.mxu2 %v4352_v57  ;;  %v3750_v0 = vld [vmem:[#allocation10 + $0x14c] sm:$0xf] }
  0xaf   :  { %1629 = vmatpush.bf16.msrb.mxu2 %v2664_v63  ;;  %1643 = vmatpush.bf16.msrb.mxu0 %v2776_v17  ;;  %v3844_v63 = vld [vmem:[#allocation10 + $0x434] sm:$0xf0]  ;;  %v2712_v8 = vor.u32 %v3750_v0, %v2709_v1  ;;  %v2917_v17 = vld [vmem:[#allocation10 + $0x2f8] sm:$0xf0] }
  0xb0   :  { %1592 = vmatpush.bf16.msra.mxu1 %v3140_v16  ;;  %v3076_v6 = vor.u32 %v3844_v63, %v3075_v62  ;;  %v3802_v16 = vld [vmem:[#allocation10 + $0x2ec] sm:$0xf]  ;;  %v3013_v62 = vld [vmem:[#allocation10 + $0x3b8] sm:$0xf0] }
  0xb1   :  { %v2920_v27 = vor.u32 %v3802_v16, %v2917_v17  ;;  %v3858_v63 = vld [vmem:[#allocation10 + $0x4ac] sm:$0xf]  ;;  %v3141_v0 = vld [vmem:[#allocation10 + $0x4b8] sm:$0xf0] }
  0xb2   :  { %1604 = vmatpush.bf16.msrb.mxu3 %v3284_v13  ;;  %v3746_v13 = vld [vmem:[#allocation10 + $0x12c] sm:$0xf]  ;;  %v3144_v9 = vor.u32 %v3858_v63, %v3141_v0  ;;  %v3077_v0 = vld [vmem:[#allocation10 + $0x438] sm:$0xf0] }
  0xb3   :  { %1630 = vmatpush.bf16.msrb.mxu2 %v2648_v12  ;;  %1644 = vmatpush.bf16.msrb.mxu0 %v2760_v29  ;;  %v3840_v12 = vld [vmem:[#allocation10 + $0x414] sm:$0xf0]  ;;  %v2696_v23 = vor.u32 %v3746_v13, %v2693_v14  ;;  %v3173_v29 = vld [vmem:[#allocation10 + $0x4f8] sm:$0xf0]  ;;  %v3854_v13 = vld [vmem:[#allocation10 + $0x48c] sm:$0xf] }
  0xb4   :  { %1593 = vmatpush.bf16.msra.mxu1 %v3124_v28  ;;  %v3060_v22 = vor.u32 %v3840_v12, %v3059_v11  ;;  %v3866_v28 = vld [vmem:[#allocation10 + $0x4ec] sm:$0xf]  ;;  %v2997_v12 = vld [vmem:[#allocation10 + $0x398] sm:$0xf0] }
  0xb5   :  { %v3176_v41 = vor.u32 %v3866_v28, %v3173_v29  ;;  %v3125_v14 = vld [vmem:[#allocation10 + $0x498] sm:$0xf0]  ;;  %v3786_v16 = vld [vmem:[#allocation10 + $0x26c] sm:$0xf]  ;;  %v3000_v21 = vor.u32 %v3822_v10, %v2997_v12 }
  0xb6   :  { %1605 = vmatpush.bf16.msrb.mxu3 %v3268_v25  ;;  %3323 = vmatmul.msk.bf16.vlgmr.msra.gmra.mxu0 %vm1352_vm0, %v4360_v45  ;;  %v3834_v25 = vld [vmem:[#allocation10 + $0x3ec] sm:$0xf] }
  0xb7   :  { %1631 = vmatpush.bf16.msrb.mxu2 %v2632_v24  ;;  %1645 = vmatpush.bf16.msrb.mxu0 %v2744_v43  ;;  %v3872_v24 = vld [vmem:[#allocation10 + $0x514] sm:$0xf0]  ;;  %v3048_v40 = vor.u32 %v3834_v25, %v3045_v26  ;;  %v2904_v43 = vor.u32 %v3798_v31, %v2901_v33  ;;  %v2981_v25 = vld [vmem:[#allocation10 + $0x378] sm:$0xf0]  ;;  %v3850_v26 = vld [vmem:[#allocation10 + $0x46c] sm:$0xf] }
  0xb8   :  { %1594 = vmatpush.bf16.msra.mxu1 %v3108_v42  ;;  %v3188_v37 = vor.u32 %v3872_v24, %v3187_v19  ;;  %v3830_v42 = vld [vmem:[#allocation10 + $0x3cc] sm:$0xf]  ;;  %v2837_v31 = vld [vmem:[#allocation10 + $0x258] sm:$0xf0] }
  0xb9   :  { %v3032_v56 = vor.u32 %v3830_v42, %v3029_v46  ;;  %v3886_v19 = vld [vmem:[#allocation10 + $0x58c] sm:$0xf]  ;;  %v3093_v46 = vld [vmem:[#allocation10 + $0x458] sm:$0xf0] }
  0xba   :  { %1606 = vmatpush.bf16.msrb.mxu3 %v3252_v39  ;;  %v3301_v39 = vld [vmem:[#allocation10 + $0x5f8] sm:$0xf0]  ;;  %v3782_v29 = vld [vmem:[#allocation10 + $0x24c] sm:$0xf] }
  0xbb   :  { %1632 = vmatpush.bf16.msrb.mxu2 %v2616_v38  ;;  %1646 = vmatpush.bf16.msrb.mxu0 %v2728_v59  ;;  %v3898_v38 = vld [vmem:[#allocation10 + $0x5ec] sm:$0xf] }
  0xbc   :  { %1595 = vmatpush.bf16.msra.mxu1 %v3092_v58  ;;  %v3304_v49 = vor.u32 %v3898_v38, %v3301_v39  ;;  %v3160_v58 = vor.u32 %v3862_v47, %v3157_v48  ;;  %v3826_v59 = vld [vmem:[#allocation10 + $0x3ac] sm:$0xf] }
  0xbd   :  { %v3882_v33 = vld [vmem:[#allocation10 + $0x56c] sm:$0xf] }
  0xbe   :  { %1607 = vmatpush.bf16.msrb.mxu3 %v3236_v53  ;;  %v3894_v53 = vld [vmem:[#allocation10 + $0x5cc] sm:$0xf]  ;;  %v3240_v47 = vor.u32 %v3882_v33, %v3237_v34 }
  0xbf   :  { %1633 = vmatpush.bf16.msrb.mxu2 %v2600_v52  ;;  %1647 = vmatpush.bf16.msrb.mxu0 %v2712_v8  ;;  %v2885_v52 = vld [vmem:[#allocation10 + $0x2b8] sm:$0xf0]  ;;  %v3288_v1 = vor.u32 %v3894_v53, %v3285_v54  ;;  %v3016_v8 = vor.u32 %v3826_v59, %v3013_v62  ;;  %v3814_v39 = vld [vmem:[#allocation10 + $0x34c] sm:$0xf] }
  0xc0   :  { %1596 = vmatpush.bf16.msra.mxu1 %v3076_v6  ;;  %v2888_v61 = vor.u32 %v3794_v50, %v2885_v52  ;;  %v364_v6 = vperm.slane %v4388_v60, 0  ;;  %v3778_v48 = vld [vmem:[#allocation10 + $0x22c] sm:$0xf]  ;;  %v3221_v54 = vld [vmem:[#allocation10 + $0x558] sm:$0xf0] }
  0xc1   :  { %v3878_v53 = vld [vmem:[#allocation10 + $0x54c] sm:$0xf]  ;;  %v2949_v62 = vld [vmem:[#allocation10 + $0x338] sm:$0xf0] }
  0xc2   :  { %1608 = vmatpush.bf16.msrb.mxu3 %v3220_v3  ;;  %v2869_v3 = vld [vmem:[#allocation10 + $0x298] sm:$0xf0]  ;;  %v3810_v59 = vld [vmem:[#allocation10 + $0x32c] sm:$0xf] }
  0xc3   :  { %1634 = vmatpush.bf16.msrb.mxu2 %v2584_v2  ;;  %1648 = vmatpush.bf16.msrb.mxu0 %v2696_v23  ;;  %v3790_v2 = vld [vmem:[#allocation10 + $0x28c] sm:$0xf] }
  0xc4   :  { %1597 = vmatpush.bf16.msra.mxu1 %v3060_v22  ;;  %v2872_v11 = vor.u32 %v3790_v2, %v2869_v3  ;;  %v3128_v22 = vor.u32 %v3854_v13, %v3125_v14  ;;  %v3818_v23 = vld [vmem:[#allocation10 + $0x36c] sm:$0xf]  ;;  %v1378_v28 = vpop.f32.mrf.mxu1  ;;  %v2805_v3 = vld [vmem:[#allocation10 + $0x218] sm:$0xf0] }
  0xc5   :  { %v3842_v63 = vld [vmem:[#allocation10 + $0x42c] sm:$0xf] }
  0xc6   :  { %1609 = vmatpush.bf16.msrb.mxu3 %v3204_v18  ;;  %v3774_v2 = vld [vmem:[#allocation10 + $0x20c] sm:$0xf]  ;;  %v3080_v12 = vor.u32 %v3842_v63, %v3077_v0 }
  0xc7   :  { %1635 = vmatpush.bf16.msrb.mxu2 %v2568_v15  ;;  %1598 = vmatmul.bf16.vlgmr.msra.gmra.mxu1 %v4364_v30  ;;  %v3272_v15 = vor.u32 %v3890_v4, %v3269_v5  ;;  %v1365_v17 = vpop.f32.mrf.mxu0  ;;  %v3874_v4 = vld [vmem:[#allocation10 + $0x52c] sm:$0xf]  ;;  %v2808_v13 = vor.u32 %v3774_v2, %v2805_v3  ;;  %v3927_v2 = vld [vmem:[#allocation11 + $0xac] sm:$0xf0] }
  0xc8   :  { %1655 = vmatpush.bf16.msrb.mxu1 %v2920_v27  ;;  %1649 = vmatpush.bf16.msrb.mxu0 %v2680_v44  ;;  %v1366_v18 = vadd.f32 %v1365_v17, %v364_v6  ;;  %v3109_v27 = vld [vmem:[#allocation10 + $0x478] sm:$0xf0]  ;;  %v3846_v44 = vld [vmem:[#allocation10 + $0x44c] sm:$0xf] }
  0xc9   :  { %v3112_v38 = vor.u32 %v3850_v26, %v3109_v27  ;;  %v3205_v6 = vld [vmem:[#allocation10 + $0x538] sm:$0xf0]  ;;  %v3806_v14 = vld [vmem:[#allocation10 + $0x30c] sm:$0xf] }
  0xca   :  { %1610 = vmatpush.bf16.msrb.mxu3 %v3188_v37  ;;  %v2984_v37 = vor.u32 %v3818_v23, %v2981_v25  ;;  %v3838_v17 = vld [vmem:[#allocation10 + $0x40c] sm:$0xf] }
  0xcb   :  { %1636 = vmatpush.bf16.msrb.mxu2 %v2552_v32  ;;  %1650 = vmatmul.bf16.vlgmr.msrb.gmra.mxu0 %v4356_v7  ;;  %v3256_v7 = vor.u32 %v3886_v19, %v3253_v20  ;;  %v1379_v32 = vadd.f32 %v1378_v28, %v1366_v18  ;;  %v3061_v18 = vld [vmem:[#allocation10 + $0x418] sm:$0xf0]  ;;  %v3870_v20 = vld [vmem:[#allocation10 + $0x50c] sm:$0xf] }
  0xcc   :  { %1656 = vmatpush.bf16.msrb.mxu1 %v2904_v43  ;;  %1694 = vmatpush.bf16.msra.mxu0 %v3304_v49  ;;  %v1391_v36 = vpop.f32.mrf.mxu2  ;;  %v1404_v42 = vpop.f32.mrf.mxu3  ;;  %v2965_v43 = vld [vmem:[#allocation10 + $0x358] sm:$0xf0]  ;;  %v3064_v23 = vor.u32 %v3838_v17, %v3061_v18  ;;  %v3919_v17 = vld [vmem:[#allocation11 + $0x6c] sm:$0xf0]  ;;  %v3917_v18 = vld [vmem:[#allocation11 + $0x64] sm:$0xf] }
  0xcd   :  { %1611 = vmatmul.bf16.vlgmr.msrb.gmra.mxu3 %v4366_v35  ;;  %v2821_v49 = vld [vmem:[#allocation10 + $0x238] sm:$0xf0]  ;;  %v1380_v5 = vpop.f32.mrf.mxu1 }
  0xce   :  { %1668 = vmatpush.bf16.msra.mxu3 %v3048_v40  ;;  %1637 = vmatmul.bf16.vlgmr.msrb.gmra.mxu2 %v4350_v55  ;;  %v2853_v55 = vld [vmem:[#allocation10 + $0x278] sm:$0xf0]  ;;  %v2840_v40 = vor.u32 %v3782_v29, %v2837_v31  ;;  %v3409_v5 = vld [vmem:[#allocation11 + $0xb0] sm:$0xf0] }
  0xcf   :  { %1681 = vmatpush.bf16.msra.mxu2 %v3176_v41  ;;  %v2856_v24 = vor.u32 %v3786_v16, %v2853_v55  ;;  %v1392_v41 = vadd.f32 %v1391_v36, %v1379_v32  ;;  %v1367_v50 = vpop.f32.mrf.mxu0  ;;  %v3208_v55 = vor.u32 %v3874_v4, %v3205_v6  ;;  %v365_v32 = vperm.slane %v4388_v60, 1  ;;  %v3925_v4 = vld [vmem:[#allocation11 + $0xa4] sm:$0xf] }
  0xd0   :  { %1657 = vmatpush.bf16.msrb.mxu1 %v2888_v61  ;;  %1695 = vmatpush.bf16.msra.mxu0 %v3288_v1  ;;  %v2824_v61 = vor.u32 %v3778_v48, %v2821_v49  ;;  %v3224_v1 = vor.u32 %v3878_v53, %v3221_v54  ;;  %v3439_v49 = vld [vmem:[#allocation11 + $0xe0] sm:$0xf]  ;;  %v3935_v50 = vld [vmem:[#allocation11 + $0xec] sm:$0xf0]  ;;  %v3441_v53 = vld [vmem:[#allocation11 + $0xf0] sm:$0xf0] }
  0xd1   :  { %v1405_v52 = vadd.f32 %v1404_v42, %v1392_v41  ;;  %v3423_v54 = vld [vmem:[#allocation11 + $0xc0] sm:$0xf] }
  0xd2   :  { %1669 = vmatpush.bf16.msra.mxu3 %v3032_v56  ;;  %v2968_v56 = vor.u32 %v3814_v39, %v2965_v43 }
  0xd3   :  { %1682 = vmatpush.bf16.msra.mxu2 %v3160_v58  ;;  %v3096_v58 = vor.u32 %v3846_v44, %v3093_v46 }
  0xd4   :  { %1658 = vmatpush.bf16.msrb.mxu1 %v2872_v11  ;;  %1696 = vmatpush.bf16.msra.mxu0 %v3272_v15  ;;  %v1393_v10 = vpop.f32.mrf.mxu2  ;;  %v2952_v11 = vor.u32 %v3810_v59, %v2949_v62  ;;  %v2933_v15 = vld [vmem:[#allocation10 + $0x318] sm:$0xf0]  ;;  %v1406_v16 = vpop.f32.mrf.mxu3  ;;  %v3929_v59 = vld [vmem:[#allocation11 + $0xc4] sm:$0xf] }
  0xd5   :  { %v3923_v10 = vld [vmem:[#allocation11 + $0x8c] sm:$0xf0] }
  0xd6   :  { %1670 = vmatpush.bf16.msra.mxu3 %v3016_v8  ;;  %v3902_v8 = vld [vmem:[#allocation10 + $0x60c] sm:$0xf] }
  0xd7   :  { %1683 = vmatpush.bf16.msra.mxu2 %v3144_v9  ;;  %v3317_v9 = vld [vmem:[#allocation10 + $0x618] sm:$0xf0] }
  0xd8   :  { %1659 = vmatpush.bf16.msrb.mxu1 %v2856_v24  ;;  %1697 = vmatpush.bf16.msra.mxu0 %v3256_v7  ;;  %v3320_v19 = vor.u32 %v3902_v8, %v3317_v9  ;;  %v3412_v8 = vor.u32 %v3925_v4, %v3409_v5  ;;  %v3391_v9 = vld [vmem:[#allocation11 + $0x80] sm:$0xf]  ;;  %v3928_v4 = vld [vmem:[#allocation11 + $0xb4] sm:$0xf0]  ;;  %v3926_v5 = vld [vmem:[#allocation11 + $0xac] sm:$0xf] }
  0xda   :  { %1671 = vmatpush.bf16.msra.mxu3 %v3000_v21  ;;  %v3189_v21 = vld [vmem:[#allocation10 + $0x518] sm:$0xf0] }
  0xdb   :  { %1684 = vmatpush.bf16.msra.mxu2 %v3128_v22  ;;  %v2936_v22 = vor.u32 %v3806_v14, %v2933_v15  ;;  %v3192_v24 = vor.u32 %v3870_v20, %v3189_v21  ;;  %v3392_v14 = vor.u32 %v3923_v10, %v3391_v9  ;;  %v3377_v20 = vld [vmem:[#allocation11 + $0x70] sm:$0xf0]  ;;  %v3359_v21 = vld [vmem:[#allocation11 + $0x40] sm:$0xf]  ;;  %v3417_v9 = vld [vmem:[#allocation11 + $0xb8] sm:$0xf0] }
  0xdc   :  { %1660 = vmatpush.bf16.msrb.mxu1 %v2840_v40  ;;  %1698 = vmatpush.bf16.msra.mxu0 %v3240_v47  ;;  %v1443_v25 = vpop.f32.mrf.mxu2  ;;  %v3551_v10 = vld [vmem:[#allocation11 + $0x1c0] sm:$0xf] }
  0xde   :  { %1672 = vmatpush.bf16.msra.mxu3 %v2984_v37 }
  0xdf   :  { %1685 = vmatpush.bf16.msra.mxu2 %v3112_v38 }
  0xe0   :  { %1661 = vmatpush.bf16.msrb.mxu1 %v2824_v61  ;;  %1699 = vmatpush.bf16.msra.mxu0 %v3224_v1  ;;  %v3425_v61 = vld [vmem:[#allocation11 + $0xd0] sm:$0xf0]  ;;  %v3407_v1 = vld [vmem:[#allocation11 + $0xa0] sm:$0xf] }
  0xe1   :  { %v3428_v0 = vor.u32 %v3929_v59, %v3425_v61  ;;  %v3408_v6 = vor.u32 %v3927_v2, %v3407_v1  ;;  %v3567_v59 = vld [vmem:[#allocation11 + $0x1e0] sm:$0xf] }
  0xe2   :  { %1673 = vmatpush.bf16.msra.mxu3 %v2968_v56  ;;  %v3931_v56 = vld [vmem:[#allocation11 + $0xcc] sm:$0xf0] }
  0xe3   :  { %1686 = vmatpush.bf16.msra.mxu2 %v3096_v58  ;;  %v1417_v26 = vpop.f32.mrf.mxu0  ;;  %v3424_v63 = vor.u32 %v3931_v56, %v3423_v54  ;;  %v3930_v56 = vld [vmem:[#allocation11 + $0xcc] sm:$0xf] }
  0xe4   :  { %1662 = vmatpush.bf16.msrb.mxu1 %v2808_v13  ;;  %1700 = vmatpush.bf16.msra.mxu0 %v3208_v55  ;;  %v1418_v27 = vadd.f32 %v1417_v26, %v1405_v52  ;;  %v1445_v28 = vpop.f32.mrf.mxu2  ;;  %v3933_v52 = vld [vmem:[#allocation11 + $0xe4] sm:$0xf]  ;;  %v3375_v55 = vld [vmem:[#allocation11 + $0x60] sm:$0xf] }
  0xe5   :  { %v3444_v58 = vor.u32 %v3933_v52, %v3441_v53  ;;  %v3932_v53 = vld [vmem:[#allocation11 + $0xd4] sm:$0xf0] }
  0xe6   :  { %1674 = vmatpush.bf16.msra.mxu3 %v2952_v11  ;;  %v1430_v7 = vpop.f32.mrf.mxu1  ;;  %v3921_v11 = vld [vmem:[#allocation11 + $0x84] sm:$0xf] }
  0xe7   :  { %1687 = vmatpush.bf16.msra.mxu2 %v3080_v12  ;;  %1663 = vmatmul.bf16.vlgmr.msrb.gmra.mxu1 %v4348_v51  ;;  %v1431_v29 = vadd.f32 %v1430_v7, %v1418_v27  ;;  %v3393_v12 = vld [vmem:[#allocation11 + $0x90] sm:$0xf0] }
  0xe8   :  { %1714 = vmatpush.bf16.msra.mxu1 %v3320_v19  ;;  %1701 = vmatpush.bf16.msra.mxu0 %v3192_v24  ;;  %v3396_v16 = vor.u32 %v3921_v11, %v3393_v12  ;;  %v3376_v19 = vor.u32 %v3919_v17, %v3375_v55  ;;  %v3913_v24 = vld [vmem:[#allocation11 + $0x44] sm:$0xf]  ;;  %v3963_v11 = vld [vmem:[#allocation11 + $0x1cc] sm:$0xf0]  ;;  %v366_v55 = vperm.slane %v4388_v60, 2 }
  0xe9   :  { %v4398_v31 = vadd.f32 %v1443_v25, %v1431_v29  ;;  %v3361_v25 = vld [vmem:[#allocation11 + $0x50] sm:$0xf0] }
  0xea   :  { %1675 = vmatpush.bf16.msra.mxu3 %v2936_v22  ;;  %v3915_v22 = vld [vmem:[#allocation11 + $0x4c] sm:$0xf0]  ;;  %v3364_v28 = vor.u32 %v3913_v24, %v3361_v25 }
  0xeb   :  { %1688 = vmatpush.bf16.msra.mxu2 %v3064_v23  ;;  %1702 = vmatmul.bf16.vlgmr.msra.gmra.mxu0 %v4366_v35  ;;  %v1419_v33 = vpop.f32.mrf.mxu0  ;;  %v3380_v23 = vor.u32 %v3917_v18, %v3377_v20  ;;  %v3360_v7 = vor.u32 %v3915_v22, %v3359_v21  ;;  %v3420_v18 = vor.u32 %v3926_v5, %v3417_v9  ;;  %v3399_v20 = vld [vmem:[#allocation11 + $0x88] sm:$0xf]  ;;  %v3924_v21 = vld [vmem:[#allocation11 + $0x94] sm:$0xf0]  ;;  %v3922_v22 = vld [vmem:[#allocation11 + $0x8c] sm:$0xf] }
  0xec   :  { %v1456_v51 = vpop.f32.mrf.mxu3  ;;  %v3909_v33 = vld [vmem:[#allocation11 + $0x24] sm:$0xf]  ;;  %v3400_v24 = vor.u32 %v3924_v21, %v3399_v20  ;;  %v3487_v9 = vld [vmem:[#allocation11 + $0x140] sm:$0xf]  ;;  %v3335_v20 = vld [vmem:[#allocation11 + $0x8] sm:$0xf] }
  0xed   :  { %1676 = vmatmul.bf16.vlgmr.msra.gmra.mxu3 %v4352_v57  ;;  %v1457_v34 = vadd.f32 %v1456_v51, %v365_v32  ;;  %v3343_v32 = vld [vmem:[#allocation11 + $0x20] sm:$0xf]  ;;  %v3911_v51 = vld [vmem:[#allocation11 + $0x2c] sm:$0xf0]  ;;  %v3908_v21 = vld [vmem:[#allocation11 + $0x14] sm:$0xf0] }
  0xee   :  { %1689 = vmatmul.bf16.vlgmr.msra.gmra.mxu2 %v4364_v30  ;;  %v1432_v57 = vpop.f32.mrf.mxu1 }
  0xef   :  { %2154 = vmatpush.bf16.msrb.mxu2 %v3444_v58  ;;  %v3345_v57 = vld [vmem:[#allocation11 + $0x30] sm:$0xf0]  ;;  %v3433_v58 = vld [vmem:[#allocation11 + $0xd8] sm:$0xf0] }
  0xf0   :  { %v3436_v61 = vor.u32 %v3930_v56, %v3433_v58  ;;  %v3503_v56 = vld [vmem:[#allocation11 + $0x160] sm:$0xf]  ;;  %v3951_v58 = vld [vmem:[#allocation11 + $0x16c] sm:$0xf0] }
  0xf1   :  { %v1469_v36 = vpop.f32.mrf.mxu2 }
  0xf2   :  { %v1470_v30 = vadd.f32 %v1469_v36, %v1457_v34  ;;  %v3344_v34 = vor.u32 %v3911_v51, %v3343_v32  ;;  %v3348_v36 = vor.u32 %v3909_v33, %v3345_v57  ;;  %v3957_v32 = vld [vmem:[#allocation11 + $0x1a4] sm:$0xf] }
  0xf3   :  { %2155 = vmatpush.bf16.msrb.mxu2 %v3428_v0  ;;  %v3569_v0 = vld [vmem:[#allocation11 + $0x1f0] sm:$0xf0] }
  0xf4   :  { %v1458_v37 = vpop.f32.mrf.mxu3 }
  0xf7   :  { %3324 = vmatmul.msk.bf16.vlgmr.msra.gmra.mxu1 %vm1352_vm0, %v4360_v45  ;;  %v3440_v45 = vor.u32 %v3935_v50, %v3439_v49  ;;  %2156 = vmatpush.bf16.msrb.mxu2 %v3412_v8  ;;  %v3934_v49 = vld [vmem:[#allocation11 + $0xec] sm:$0xf]  ;;  %v3449_v50 = vld [vmem:[#allocation11 + $0xf8] sm:$0xf0] }
  0xf8   :  { %v3452_v52 = vor.u32 %v3934_v49, %v3449_v50 }
  0xf9   :  { %v1471_v35 = vpop.f32.mrf.mxu2  ;;  %2128 = vmatpush.bf16.msrb.mxu3 %v3440_v45  ;;  %v3431_v45 = vld [vmem:[#allocation11 + $0xc8] sm:$0xf] }
  0xfa   :  { %v3327_v35 = vld [vmem:[#allocation11] sm:$0xf]  ;;  %v3432_v54 = vor.u32 %v3932_v53, %v3431_v45  ;;  %v3914_v45 = vld [vmem:[#allocation11 + $0x4c] sm:$0xf] }
  0xfb   :  { %2157 = vmatpush.bf16.msrb.mxu2 %v3396_v16  ;;  %v3553_v16 = vld [vmem:[#allocation11 + $0x1d0] sm:$0xf0] }
  0xfd   :  { %2129 = vmatpush.bf16.msrb.mxu3 %v3424_v63  ;;  %v3965_v63 = vld [vmem:[#allocation11 + $0x1e4] sm:$0xf] }
  0xfe   :  { %v3572_v2 = vor.u32 %v3965_v63, %v3569_v0  ;;  %v3505_v63 = vld [vmem:[#allocation11 + $0x170] sm:$0xf0] }
  0xff   :  { %2158 = vmatpush.bf16.msrb.mxu2 %v3380_v23  ;;  %v3401_v23 = vld [vmem:[#allocation11 + $0x98] sm:$0xf0] }
 0x100   :  { %2167 = vmatpush.bf16.msrb.mxu0 %v3572_v2 }
 0x101   :  { %2130 = vmatpush.bf16.msrb.mxu3 %v3408_v6 }
 0x103   :  { %v1482_v38 = vpop.f32.mrf.mxu0  ;;  %2159 = vmatpush.bf16.msrb.mxu2 %v3364_v28  ;;  %v3959_v28 = vld [vmem:[#allocation11 + $0x1ac] sm:$0xf0] }
 0x104   :  { %v1483_v39 = vadd.f32 %v1482_v38, %v1470_v30  ;;  %v3907_v38 = vld [vmem:[#allocation11 + $0xc] sm:$0xf0] }
 0x105   :  { %2131 = vmatpush.bf16.msrb.mxu3 %v3392_v14  ;;  %v3961_v14 = vld [vmem:[#allocation11 + $0x1c4] sm:$0xf] }
 0x106   :  { %v1495_v40 = vpop.f32.mrf.mxu1 }
 0x107   :  { %v1496_v41 = vadd.f32 %v1495_v40, %v1483_v39  ;;  %2160 = vmatpush.bf16.msrb.mxu2 %v3348_v36  ;;  %v3905_v39 = vld [vmem:[#allocation11 + $0x4] sm:$0xf] }
 0x109   :  { %2132 = vmatpush.bf16.msrb.mxu3 %v3376_v19  ;;  %v3556_v19 = vor.u32 %v3961_v14, %v3553_v16  ;;  %v3945_v16 = vld [vmem:[#allocation11 + $0x144] sm:$0xf] }
 0x10b   :  { %v1484_v44 = vpop.f32.mrf.mxu0  ;;  %2168 = vmatpush.bf16.msrb.mxu0 %v3556_v19 }
 0x10c   :  { %v1508_v42 = vpop.f32.mrf.mxu3  ;;  %v3447_v44 = vld [vmem:[#allocation11 + $0xe8] sm:$0xf] }
 0x10d   :  { %v1509_v43 = vadd.f32 %v1508_v42, %v1496_v41  ;;  %2133 = vmatpush.bf16.msrb.mxu3 %v3360_v7  ;;  %v3328_v42 = vor.u32 %v3907_v38, %v3327_v35  ;;  %v3535_v7 = vld [vmem:[#allocation11 + $0x1a0] sm:$0xf]  ;;  %v3920_v35 = vld [vmem:[#allocation11 + $0x74] sm:$0xf0]  ;;  %v3918_v38 = vld [vmem:[#allocation11 + $0x6c] sm:$0xf] }
 0x10e   :  { %v1497_v48 = vpop.f32.mrf.mxu1  ;;  %v3536_v33 = vor.u32 %v3959_v28, %v3535_v7 }
 0x111   :  { %v1521_v46 = vpop.f32.mrf.mxu2  ;;  %2134 = vmatpush.bf16.msrb.mxu3 %v3344_v34  ;;  %v3537_v34 = vld [vmem:[#allocation11 + $0x1b0] sm:$0xf0] }
 0x112   :  { %v1522_v47 = vadd.f32 %v1521_v46, %v1509_v43  ;;  %v3329_v43 = vld [vmem:[#allocation11 + $0x10] sm:$0xf0]  ;;  %v3936_v46 = vld [vmem:[#allocation11 + $0xf4] sm:$0xf0]  ;;  %v3540_v57 = vor.u32 %v3957_v32, %v3537_v34 }
 0x113   :  { %v3448_v48 = vor.u32 %v3936_v46, %v3447_v44 }
 0x114   :  { %v1510_v62 = vpop.f32.mrf.mxu3  ;;  %2169 = vmatpush.bf16.msrb.mxu0 %v3540_v57 }
 0x115   :  { %2135 = vmatpush.bf16.msrb.mxu3 %v3328_v42  ;;  %v3967_v62 = vld [vmem:[#allocation11 + $0x1ec] sm:$0xf0] }
 0x116   :  { %v3568_v1 = vor.u32 %v3967_v62, %v3567_v59  ;;  %v3955_v42 = vld [vmem:[#allocation11 + $0x18c] sm:$0xf0]  ;;  %v3949_v62 = vld [vmem:[#allocation11 + $0x164] sm:$0xf] }
 0x117   :  { %v3508_v0 = vor.u32 %v3949_v62, %v3505_v63  ;;  %v3543_v62 = vld [vmem:[#allocation11 + $0x1a8] sm:$0xf]  ;;  %v3960_v63 = vld [vmem:[#allocation11 + $0x1b4] sm:$0xf0] }
 0x118   :  { %2141 = vmatpush.bf16.msrb.mxu1 %v3568_v1 }
 0x119   :  { %v1523_v3 = vpop.f32.mrf.mxu2  ;;  %2180 = vmatpush.bf16.msra.mxu3 %v3448_v48  ;;  %v3521_v48 = vld [vmem:[#allocation11 + $0x190] sm:$0xf0] }
 0x11a   :  { %v3415_v3 = vld [vmem:[#allocation11 + $0xa8] sm:$0xf] }
 0x11b   :  { %v3416_v12 = vor.u32 %v3928_v4, %v3415_v3  ;;  %v3912_v3 = vld [vmem:[#allocation11 + $0x34] sm:$0xf0]  ;;  %v3910_v4 = vld [vmem:[#allocation11 + $0x2c] sm:$0xf] }
 0x11c   :  { %v1534_v13 = vpop.f32.mrf.mxu3 }
 0x11d   :  { %v4403_v15 = vadd.f32 %v1534_v13, %v1522_v47  ;;  %v3332_v47 = vor.u32 %v3905_v39, %v3329_v43  ;;  %2181 = vmatpush.bf16.msra.mxu3 %v3432_v54  ;;  %v3552_v13 = vor.u32 %v3963_v11, %v3551_v10  ;;  %v3385_v39 = vld [vmem:[#allocation11 + $0x78] sm:$0xf0]  ;;  %v3947_v10 = vld [vmem:[#allocation11 + $0x14c] sm:$0xf0] }
 0x11e   :  { %v3388_v44 = vor.u32 %v3918_v38, %v3385_v39  ;;  %v3369_v54 = vld [vmem:[#allocation11 + $0x58] sm:$0xf0]  ;;  %v3488_v14 = vor.u32 %v3947_v10, %v3487_v9  ;;  %v3937_v38 = vld [vmem:[#allocation11 + $0x104] sm:$0xf]  ;;  %v3457_v39 = vld [vmem:[#allocation11 + $0x110] sm:$0xf0] }
 0x11f   :  { %2161 = vmatpush.bf16.msrb.mxu2 %v3332_v47  ;;  %2142 = vmatpush.bf16.msrb.mxu1 %v3552_v13  ;;  %v3953_v47 = vld [vmem:[#allocation11 + $0x184] sm:$0xf]  ;;  %v3372_v59 = vor.u32 %v3914_v45, %v3369_v54  ;;  %v3962_v45 = vld [vmem:[#allocation11 + $0x1cc] sm:$0xf]  ;;  %v3561_v54 = vld [vmem:[#allocation11 + $0x1d8] sm:$0xf0] }
 0x120   :  { %v3524_v49 = vor.u32 %v3953_v47, %v3521_v48  ;;  %v3577_v47 = vld [vmem:[#allocation11 + $0x1f8] sm:$0xf0]  ;;  %v3954_v9 = vld [vmem:[#allocation11 + $0x18c] sm:$0xf] }
 0x121   :  { %2182 = vmatpush.bf16.msra.mxu3 %v3416_v12  ;;  %v3529_v10 = vld [vmem:[#allocation11 + $0x198] sm:$0xf0] }
 0x122   :  { %2170 = vmatpush.bf16.msrb.mxu0 %v3524_v49 }
 0x123   :  { %v4405_v27 = vpop.f32.mrf.mxu0  ;;  %2206 = vmatpush.bf16.msra.mxu2 %v3452_v52  ;;  %2143 = vmatpush.bf16.msrb.mxu1 %v3536_v33  ;;  %v3916_v52 = vld [vmem:[#allocation11 + $0x54] sm:$0xf0]  ;;  %v3473_v33 = vld [vmem:[#allocation11 + $0x130] sm:$0xf0] }
 0x124   :  { %v1536_v26 = vpop.f32.mrf.mxu3 }
 0x125   :  { %v3404_v26 = vor.u32 %v3922_v22, %v3401_v23  ;;  %2183 = vmatpush.bf16.msra.mxu3 %v3400_v24  ;;  %v3906_v22 = vld [vmem:[#allocation11 + $0xc] sm:$0xf]  ;;  %v3336_v23 = vor.u32 %v3908_v21, %v3335_v20  ;;  %v3337_v24 = vld [vmem:[#allocation11 + $0x18] sm:$0xf0]  ;;  %v3495_v21 = vld [vmem:[#allocation11 + $0x148] sm:$0xf] }
 0x126   :  { %v4407_v29 = vpop.f32.mrf.mxu1  ;;  %2171 = vmatpush.bf16.msrb.mxu0 %v3508_v0  ;;  %v3340_v28 = vor.u32 %v3906_v22, %v3337_v24  ;;  %v3958_v0 = vld [vmem:[#allocation11 + $0x1ac] sm:$0xf]  ;;  %v3513_v20 = vld [vmem:[#allocation11 + $0x178] sm:$0xf0]  ;;  %v3948_v22 = vld [vmem:[#allocation11 + $0x154] sm:$0xf0] }
 0x127   :  { %2207 = vmatpush.bf16.msra.mxu2 %v3436_v61  ;;  %v1548_v25 = vadd.f32 %v4407_v29, %v366_v55  ;;  %v3504_v61 = vor.u32 %v3951_v58, %v3503_v56  ;;  %v3489_v55 = vld [vmem:[#allocation11 + $0x150] sm:$0xf0]  ;;  %v3564_v58 = vor.u32 %v3962_v45, %v3561_v54 }
 0x12b   :  { %v1575_v37 = vpop.f32.mrf.mxu0  ;;  %2208 = vmatpush.bf16.msra.mxu2 %v3420_v18 }
 0x12c   :  { %v3383_v37 = vld [vmem:[#allocation11 + $0x68] sm:$0xf] }
 0x12d   :  { %v3384_v29 = vor.u32 %v3920_v35, %v3383_v37  ;;  %v3455_v37 = vld [vmem:[#allocation11 + $0x100] sm:$0xf]  ;;  %v3939_v35 = vld [vmem:[#allocation11 + $0x10c] sm:$0xf0] }
 0x12e   :  { %v1549_v41 = vpop.f32.mrf.mxu1 }
 0x12f   :  { %2209 = vmatpush.bf16.msra.mxu2 %v3404_v26  ;;  %v3519_v41 = vld [vmem:[#allocation11 + $0x180] sm:$0xf]  ;;  %2184 = vmatpush.bf16.msra.mxu3 %v3384_v29  ;;  %v3943_v26 = vld [vmem:[#allocation11 + $0x12c] sm:$0xf0]  ;;  %v3456_v29 = vor.u32 %v3939_v35, %v3455_v37 }
 0x130   :  { %v4409_v30 = vpop.f32.mrf.mxu3  ;;  %v3520_v46 = vor.u32 %v3955_v42, %v3519_v41  ;;  %v3575_v41 = vld [vmem:[#allocation11 + $0x1e8] sm:$0xf]  ;;  %v3968_v42 = vld [vmem:[#allocation11 + $0x1f4] sm:$0xf0] }
 0x131   :  { %v4411_v40 = vpop.f32.mrf.mxu2  ;;  %v1561_v36 = vadd.f32 %v4409_v30, %v1548_v25  ;;  %v3367_v30 = vld [vmem:[#allocation11 + $0x48] sm:$0xf]  ;;  %v3471_v25 = vld [vmem:[#allocation11 + $0x120] sm:$0xf] }
 0x132   :  { %2144 = vmatpush.bf16.msrb.mxu1 %v3520_v46  ;;  %v3368_v53 = vor.u32 %v3916_v52, %v3367_v30  ;;  %v3472_v32 = vor.u32 %v3943_v26, %v3471_v25  ;;  %v3966_v46 = vld [vmem:[#allocation11 + $0x1ec] sm:$0xf]  ;;  %v3559_v30 = vld [vmem:[#allocation11 + $0x1c8] sm:$0xf]  ;;  %v3964_v52 = vld [vmem:[#allocation11 + $0x1d4] sm:$0xf0] }
 0x133   :  { %v4413_v8 = vpop.f32.mrf.mxu0  ;;  %v1574_v50 = vadd.f32 %v4405_v27, %v1561_v36  ;;  %2210 = vmatpush.bf16.msra.mxu2 %v3388_v44  ;;  %v3351_v27 = vld [vmem:[#allocation11 + $0x28] sm:$0xf]  ;;  %v3576_v44 = vor.u32 %v3968_v42, %v3575_v41  ;;  %v3580_v49 = vor.u32 %v3966_v46, %v3577_v47  ;;  %v3946_v25 = vld [vmem:[#allocation11 + $0x14c] sm:$0xf]  ;;  %v3497_v26 = vld [vmem:[#allocation11 + $0x158] sm:$0xf0] }
 0x134   :  { %2185 = vmatpush.bf16.msra.mxu3 %v3368_v53  ;;  %v3352_v5 = vor.u32 %v3912_v3, %v3351_v27  ;;  %v3560_v53 = vor.u32 %v3964_v52, %v3559_v30  ;;  %v3544_v27 = vor.u32 %v3960_v63, %v3543_v62  ;;  %v3545_v3 = vld [vmem:[#allocation11 + $0x1b8] sm:$0xf0]  ;;  %v3940_v41 = vld [vmem:[#allocation11 + $0x114] sm:$0xf0]  ;;  %v3938_v42 = vld [vmem:[#allocation11 + $0x10c] sm:$0xf] }
 0x135   :  { %v1587_v1 = vadd.f32 %v4411_v40, %v1574_v50  ;;  %v3492_v40 = vor.u32 %v3945_v16, %v3489_v55  ;;  %v1720_v50 = vld [vmem:[#allocation5] sm:$0xff]  ;;  %v3639_v62 = vld [vmem:[#allocation14 + $0x70] sm:$0xf] }
 0x136   :  { %2145 = vmatpush.bf16.msrb.mxu1 %v3504_v61  ;;  %v3952_v55 = vld [vmem:[#allocation11 + $0x174] sm:$0xf0]  ;;  %v3984_v63 = vld [vmem:[#allocation14 + $0x74] sm:$0xf0] }
 0x137   :  { %2211 = vmatpush.bf16.msra.mxu2 %v3372_v59  ;;  %2172 = vmatpush.bf16.msrb.mxu0 %v3492_v40  ;;  %v367_v59 = vperm.slane %v4388_v60, 3  ;;  %v3532_v60 = vor.u32 %v3954_v9, %v3529_v10  ;;  %v3999_v9 = vld [vmem:[#allocation14 + $0xf4] sm:$0xf]  ;;  %v3705_v10 = vld [vmem:[#allocation14 + $0xf8] sm:$0xf0] }
 0x138   :  { %v1562_v6 = vpop.f32.mrf.mxu3  ;;  %2186 = vmatpush.bf16.msra.mxu3 %v3352_v5  ;;  %v3956_v5 = vld [vmem:[#allocation11 + $0x194] sm:$0xf0] }
 0x139   :  { %v1588_v17 = vpop.f32.mrf.mxu2  ;;  %v3353_v6 = vld [vmem:[#allocation11 + $0x38] sm:$0xf0] }
 0x13a   :  { %v3356_v13 = vor.u32 %v3910_v4, %v3353_v6  ;;  %2146 = vmatpush.bf16.msrb.mxu1 %v3488_v14  ;;  %v3527_v4 = vld [vmem:[#allocation11 + $0x188] sm:$0xf]  ;;  %v3548_v6 = vor.u32 %v3958_v0, %v3545_v3  ;;  %v3703_v0 = vld [vmem:[#allocation14 + $0xf0] sm:$0xf]  ;;  %v3983_v3 = vld [vmem:[#allocation14 + $0x74] sm:$0xf] }
 0x13b   :  { %v1627_v51 = vpop.f32.mrf.mxu0 }
 0x13c   :  { %2212 = vmatpush.bf16.msra.mxu2 %v3356_v13  ;;  %v3941_v51 = vld [vmem:[#allocation11 + $0x124] sm:$0xf]  ;;  %2187 = vmatpush.bf16.msra.mxu3 %v3336_v23 }
 0x13d   :  { %v3476_v34 = vor.u32 %v3941_v51, %v3473_v33  ;;  %v3944_v33 = vld [vmem:[#allocation11 + $0x134] sm:$0xf0] }
 0x13e   :  { %2147 = vmatpush.bf16.msrb.mxu1 %v3472_v32 }
 0x13f   :  { %2173 = vmatpush.bf16.msrb.mxu0 %v3476_v34  ;;  %v3942_v34 = vld [vmem:[#allocation11 + $0x12c] sm:$0xf] }
 0x140   :  { %2213 = vmatpush.bf16.msra.mxu2 %v3340_v28  ;;  %v3479_v28 = vld [vmem:[#allocation11 + $0x128] sm:$0xf] }
 0x141   :  { %v3480_v35 = vor.u32 %v3944_v33, %v3479_v28  ;;  %v3979_v28 = vld [vmem:[#allocation14 + $0x54] sm:$0xf] }
 0x142   :  { %2148 = vmatpush.bf16.msrb.mxu1 %v3456_v29  ;;  %v3463_v29 = vld [vmem:[#allocation11 + $0x108] sm:$0xf] }
 0x143   :  { %v3464_v46 = vor.u32 %v3940_v41, %v3463_v29  ;;  %v3977_v41 = vld [vmem:[#allocation14 + $0x44] sm:$0xf] }
 0x144   :  { %v1599_v43 = vpop.f32.mrf.mxu1 }
 0x145   :  { %v1600_v11 = vadd.f32 %v1599_v43, %v1587_v1  ;;  %v3460_v43 = vor.u32 %v3937_v38, %v3457_v39 }
 0x146   :  { %2193 = vmatpush.bf16.msra.mxu1 %v3576_v44 }
 0x147   :  { %2174 = vmatpush.bf16.msrb.mxu0 %v3460_v43 }
 0x148   :  { %v4420_v2 = vpop.f32.mrf.mxu0 }
 0x14a   :  { %2194 = vmatpush.bf16.msra.mxu1 %v3560_v53  ;;  %v1721_v53 = vld [vmem:[#allocation5 + $0x8] sm:$0xff] }
 0x14b   :  { %2219 = vmatpush.bf16.msra.mxu0 %v3580_v49 }
 0x14c   :  { %v1601_v12 = vpop.f32.mrf.mxu1 }
 0x14d   :  { %v3528_v12 = vor.u32 %v3956_v5, %v3527_v4  ;;  %v3641_v4 = vld [vmem:[#allocation14 + $0x78] sm:$0xf0] }
 0x14e   :  { %2195 = vmatpush.bf16.msra.mxu1 %v3544_v27  ;;  %v4000_v27 = vld [vmem:[#allocation14 + $0xf4] sm:$0xf0] }
 0x14f   :  { %2220 = vmatpush.bf16.msra.mxu0 %v3564_v58  ;;  %v3704_v5 = vor.u32 %v4000_v27, %v3703_v0  ;;  %v3599_v0 = vld [vmem:[#allocation14 + $0x20] sm:$0xf] }
 0x150   :  { %v1612_v17 = vpop.f32.mrf.mxu3  ;;  %v1653_v36 = vpop.f32.mrf.mxu0  ;;  %v3663_v27 = vld [vmem:[#allocation14 + $0xa0] sm:$0xf] }
 0x151   :  { %v1613_v18 = vadd.f32 %v1612_v17, %v1600_v11  ;;  %v4422_v19 = vpop.f32.mrf.mxu2  ;;  %v3950_v17 = vld [vmem:[#allocation11 + $0x16c] sm:$0xf] }
 0x152   :  { %v1639_v13 = vadd.f32 %v4422_v19, %v367_v59  ;;  %2196 = vmatpush.bf16.msra.mxu1 %v3528_v12  ;;  %v3516_v24 = vor.u32 %v3950_v17, %v3513_v20  ;;  %v3496_v19 = vor.u32 %v3948_v22, %v3495_v21  ;;  %v3708_v12 = vor.u32 %v3999_v9, %v3705_v10  ;;  %v3633_v17 = vld [vmem:[#allocation14 + $0x68] sm:$0xf0]  ;;  %v3997_v20 = vld [vmem:[#allocation14 + $0xe4] sm:$0xf]  ;;  %v3623_v22 = vld [vmem:[#allocation14 + $0x50] sm:$0xf] }
 0x153   :  { %v1626_v7 = vadd.f32 %v4413_v8, %v1613_v18  ;;  %2221 = vmatpush.bf16.msra.mxu0 %v3548_v6  ;;  %v3644_v6 = vor.u32 %v3983_v3, %v3641_v4  ;;  %v3697_v21 = vld [vmem:[#allocation14 + $0xe8] sm:$0xf0]  ;;  %v3990_v4 = vld [vmem:[#allocation14 + $0xa4] sm:$0xf0] }
 0x154   :  { %v1652_v40 = vadd.f32 %v4420_v2, %v1639_v13  ;;  %v3982_v13 = vld [vmem:[#allocation14 + $0x64] sm:$0xf0]  ;;  %v3664_v9 = vor.u32 %v3990_v4, %v3663_v27 }
 0x155   :  { %v1722_v57 = vmul.f32 1.442695, %v1626_v7  ;;  %v3500_v7 = vor.u32 %v3946_v25, %v3497_v26  ;;  %v3687_v25 = vld [vmem:[#allocation14 + $0xd0] sm:$0xf]  ;;  %v3996_v26 = vld [vmem:[#allocation14 + $0xd4] sm:$0xf0] }
 0x157   :  { %4014 = vpow2.f32 %v1722_v57  ;;  %2222 = vmatpush.bf16.msra.mxu0 %v3532_v60  ;;  %v3481_v57 = vld [vmem:[#allocation11 + $0x138] sm:$0xf0]  ;;  %v3631_v60 = vld [vmem:[#allocation14 + $0x60] sm:$0xf] }
 0x158   :  { %v1614_v8 = vpop.f32.mrf.mxu3  ;;  %v3484_v38 = vor.u32 %v3942_v34, %v3481_v57 }
 0x159   :  { %v1640_v48 = vpop.f32.mrf.mxu2  ;;  %v3465_v8 = vld [vmem:[#allocation11 + $0x118] sm:$0xf0] }
 0x15a   :  { %v3468_v47 = vor.u32 %v3938_v42, %v3465_v8  ;;  %v3617_v42 = vld [vmem:[#allocation14 + $0x48] sm:$0xf0] }
 0x15b   :  { %2223 = vmatpush.bf16.msra.mxu0 %v3516_v24  ;;  %v3980_v24 = vld [vmem:[#allocation14 + $0x54] sm:$0xf0] }
 0x15d   :  { %v4015_v56 = vpop.eup %4014 }
 0x15e   :  { %v1726_v61 = vmul.f32 %v4015_v56, %v1720_v50 }
 0x15f   :  { %2224 = vmatpush.bf16.msra.mxu0 %v3500_v7  ;;  %v3688_v7 = vor.u32 %v3996_v26, %v3687_v25 }
 0x160   :  { %v1728_v1 = vadd.f32 %v1726_v61, %v4398_v31  ;;  %v3511_v31 = vld [vmem:[#allocation11 + $0x168] sm:$0xf] }
 0x161   :  { %v3512_v18 = vor.u32 %v3952_v55, %v3511_v31  ;;  %v3998_v31 = vld [vmem:[#allocation14 + $0xe4] sm:$0xf0]  ;;  %v3981_v55 = vld [vmem:[#allocation14 + $0x64] sm:$0xf] }
 0x162   :  { %v1730_v11 = vmax.f32 %v1728_v1, 0.0  ;;  %v3640_v1 = vor.u32 %v3984_v63, %v3639_v62  ;;  %v3673_v62 = vld [vmem:[#allocation14 + $0xb8] sm:$0xf0] }
 0x163   :  { %2197 = vmatpush.bf16.msra.mxu1 %v3512_v18  ;;  %2225 = vmatpush.bf16.msra.mxu0 %v3484_v38  ;;  %v3636_v18 = vor.u32 %v3981_v55, %v3633_v17  ;;  %v3679_v38 = vld [vmem:[#allocation14 + $0xc0] sm:$0xf] }
 0x164   :  { %v1664_v14 = vpop.f32.mrf.mxu1  ;;  %v1732_v16 = vpack.c.bf16 %v1730_v11, %v1730_v11 }
 0x165   :  { %v1665_v32 = vadd.f32 %v1664_v14, %v1652_v40  ;;  %v3695_v14 = vld [vmem:[#allocation14 + $0xe0] sm:$0xf] }
 0x166   :  { %2136 = vmatmul.bf16.vlgmr.msrb.gmra.mxu3 %v1732_v16  ;;  %2162 = vmatmul.bf16.vlgmr.msrb.gmra.mxu2 %v1732_v16  ;;  %v3696_v40 = vor.u32 %v3998_v31, %v3695_v14  ;;  %v3591_v14 = vld [vmem:[#allocation14 + $0x10] sm:$0xf] }
 0x167   :  { %2198 = vmatpush.bf16.msra.mxu1 %v3496_v19  ;;  %2226 = vmatpush.bf16.msra.mxu0 %v3468_v47  ;;  %v3624_v19 = vor.u32 %v3980_v24, %v3623_v22  ;;  %v3655_v31 = vld [vmem:[#allocation14 + $0x90] sm:$0xf]  ;;  %v3593_v22 = vld [vmem:[#allocation14 + $0x18] sm:$0xf0] }
 0x168   :  { %v1703_v23 = vpop.f32.mrf.mxu0  ;;  %2444 = vmatpush.bf16.msrb.mxu3 %v3640_v1  ;;  %2470 = vmatpush.bf16.msrb.mxu2 %v3644_v6  ;;  %v3974_v1 = vld [vmem:[#allocation14 + $0x24] sm:$0xf0]  ;;  %v3601_v6 = vld [vmem:[#allocation14 + $0x28] sm:$0xf0]  ;;  %v3657_v24 = vld [vmem:[#allocation14 + $0x98] sm:$0xf0] }
 0x169   :  { %v3600_v3 = vor.u32 %v3974_v1, %v3599_v0 }
 0x16b   :  { %2199 = vmatpush.bf16.msra.mxu1 %v3480_v35  ;;  %v3978_v35 = vld [vmem:[#allocation14 + $0x44] sm:$0xf0] }
 0x16c   :  { %v1666_v51 = vpop.f32.mrf.mxu1  ;;  %2471 = vmatpush.bf16.msrb.mxu2 %v3636_v18  ;;  %v3988_v18 = vld [vmem:[#allocation14 + $0x94] sm:$0xf0] }
 0x16d   :  { %v3995_v51 = vld [vmem:[#allocation14 + $0xd4] sm:$0xf] }
 0x16f   :  { %2200 = vmatpush.bf16.msra.mxu1 %v3464_v46  ;;  %v3681_v46 = vld [vmem:[#allocation14 + $0xc8] sm:$0xf0] }
 0x170   :  { %v1677_v36 = vpop.f32.mrf.mxu3  ;;  %v1705_v43 = vpop.f32.mrf.mxu0 }
 0x171   :  { %v1678_v2 = vadd.f32 %v1677_v36, %v1665_v32  ;;  %v1690_v37 = vpop.f32.mrf.mxu2  ;;  %v3625_v32 = vld [vmem:[#allocation14 + $0x58] sm:$0xf0]  ;;  %v3620_v43 = vor.u32 %v3977_v41, %v3617_v42 }
 0x172   :  { %v3628_v57 = vor.u32 %v3979_v28, %v3625_v32  ;;  %v3689_v36 = vld [vmem:[#allocation14 + $0xd8] sm:$0xf0]  ;;  %v3647_v28 = vld [vmem:[#allocation14 + $0x80] sm:$0xf] }
 0x173   :  { %v1691_v39 = vadd.f32 %v1690_v37, %v1678_v2  ;;  %v3692_v2 = vor.u32 %v3995_v51, %v3689_v36  ;;  %v3615_v37 = vld [vmem:[#allocation14 + $0x40] sm:$0xf]  ;;  %v3986_v51 = vld [vmem:[#allocation14 + $0x84] sm:$0xf0]  ;;  %v1798_v42 = vld [vmem:[#allocation13] sm:$0xf] }
 0x174   :  { %v1716_v48 = vpop.f32.mrf.mxu1  ;;  %2472 = vmatpush.bf16.msrb.mxu2 %v3628_v57  ;;  %v3616_v29 = vor.u32 %v3978_v35, %v3615_v37  ;;  %v3985_v35 = vld [vmem:[#allocation14 + $0x84] sm:$0xf] }
 0x175   :  { %v1704_v44 = vadd.f32 %v1703_v23, %v1691_v39  ;;  %v3700_v23 = vor.u32 %v3997_v20, %v3697_v21  ;;  %v3994_v39 = vld [vmem:[#allocation14 + $0xc4] sm:$0xf0]  ;;  %v3971_v20 = vld [vmem:[#allocation14 + $0x14] sm:$0xf]  ;;  %v3656_v21 = vor.u32 %v3988_v18, %v3655_v31 }
 0x176   :  { %2188 = vmatmul.bf16.vlgmr.msra.gmra.mxu3 %v1732_v16  ;;  %2214 = vmatmul.bf16.vlgmr.msra.gmra.mxu2 %v1732_v16  ;;  %v3632_v16 = vor.u32 %v3982_v13, %v3631_v60  ;;  %v3680_v8 = vor.u32 %v3994_v39, %v3679_v38  ;;  %v3665_v60 = vld [vmem:[#allocation14 + $0xa8] sm:$0xf0]  ;;  %v3596_v25 = vor.u32 %v3971_v20, %v3593_v22  ;;  %v2501_v22 = vlaneseq }
 0x177   :  { %v1717_v49 = vadd.f32 %v1716_v48, %v1704_v44  ;;  %v3993_v44 = vld [vmem:[#allocation14 + $0xc4] sm:$0xf]  ;;  %v3607_v48 = vld [vmem:[#allocation14 + $0x30] sm:$0xf]  ;;  %v3649_v38 = vld [vmem:[#allocation14 + $0x88] sm:$0xf0] }
 0x178   :  { %v1679_v50 = vpop.f32.mrf.mxu3  ;;  %2445 = vmatpush.bf16.msrb.mxu3 %v3632_v16  ;;  %v3684_v47 = vor.u32 %v3993_v44, %v3681_v46  ;;  %2473 = vmatpush.bf16.msrb.mxu2 %v3620_v43  ;;  %v3972_v16 = vld [vmem:[#allocation14 + $0x14] sm:$0xf0]  ;;  %v1803_v43 = vperm.slane %v1798_v42, 3 }
 0x179   :  { %v1692_v30 = vpop.f32.mrf.mxu2  ;;  %v1724_v52 = vmul.f32 1.442695, %v1717_v49  ;;  %v3976_v49 = vld [vmem:[#allocation14 + $0x34] sm:$0xf0]  ;;  %v3671_v50 = vld [vmem:[#allocation14 + $0xb0] sm:$0xf] }
 0x17b   :  { %4016 = vpow2.f32 %v1724_v52 }
 0x17c   :  { %v1718_v45 = vpop.f32.mrf.mxu1  ;;  %2446 = vmatpush.bf16.msrb.mxu3 %v3624_v19  ;;  %v3583_v19 = vld [vmem:[#allocation14] sm:$0xf] }
 0x17d   :  { %v3608_v45 = vor.u32 %v3976_v49, %v3607_v48 }
 0x180   :  { %2447 = vmatpush.bf16.msrb.mxu3 %v3616_v29  ;;  %v3652_v29 = vor.u32 %v3985_v35, %v3649_v38 }
 0x181   :  { %v4017_v54 = vpop.eup %4016 }
 0x182   :  { %v1727_v56 = vmul.f32 %v4017_v54, %v1721_v53  ;;  %v3992_v53 = vld [vmem:[#allocation14 + $0xb4] sm:$0xf0]  ;;  %v3975_v54 = vld [vmem:[#allocation14 + $0x34] sm:$0xf] }
 0x184   :  { %v1729_v58 = vadd.f32 %v1727_v56, %v4403_v15  ;;  %v3609_v56 = vld [vmem:[#allocation14 + $0x38] sm:$0xf0]  ;;  %2448 = vmatpush.bf16.msrb.mxu3 %v3608_v45 }
 0x186   :  { %v1731_v59 = vmax.f32 %v1729_v58, 0.0  ;;  %v3672_v58 = vor.u32 %v3992_v53, %v3671_v50 }
 0x188   :  { %v1733_v61 = vpack.c.bf16 %v1731_v59, %v1731_v59  ;;  %v3612_v59 = vor.u32 %v3975_v54, %v3609_v56  ;;  %2449 = vmatpush.bf16.msrb.mxu3 %v3600_v3  ;;  %v1800_v54 = vperm.slane %v1798_v42, 0  ;;  %v1801_v56 = vperm.slane %v1798_v42, 1 }
 0x18a   :  { %2149 = vmatmul.bf16.vlgmr.msrb.gmra.mxu1 %v1733_v61  ;;  %2175 = vmatmul.bf16.vlgmr.msrb.gmra.mxu0 %v1733_v61 }
 0x18b   :  { %2457 = vmatpush.bf16.msrb.mxu1 %v3704_v5  ;;  %2483 = vmatpush.bf16.msrb.mxu0 %v3708_v12  ;;  %v3973_v5 = vld [vmem:[#allocation14 + $0x24] sm:$0xf] }
 0x18c   :  { %2474 = vmatpush.bf16.msrb.mxu2 %v3612_v59  ;;  %v3604_v10 = vor.u32 %v3973_v5, %v3601_v6  ;;  %v3989_v12 = vld [vmem:[#allocation14 + $0xa4] sm:$0xf] }
 0x18d   :  { %v3668_v13 = vor.u32 %v3989_v12, %v3665_v60 }
 0x18f   :  { %2458 = vmatpush.bf16.msrb.mxu1 %v3696_v40  ;;  %2484 = vmatpush.bf16.msrb.mxu0 %v3700_v23  ;;  %v3592_v40 = vor.u32 %v3972_v16, %v3591_v14  ;;  %v3987_v23 = vld [vmem:[#allocation14 + $0x94] sm:$0xf] }
 0x190   :  { %2475 = vmatpush.bf16.msrb.mxu2 %v3604_v10  ;;  %v3660_v26 = vor.u32 %v3987_v23, %v3657_v24 }
 0x191   :  { %2450 = vmatpush.bf16.msrb.mxu3 %v3592_v40 }
 0x193   :  { %2459 = vmatpush.bf16.msrb.mxu1 %v3688_v7  ;;  %2485 = vmatpush.bf16.msrb.mxu0 %v3692_v2  ;;  %v3970_v7 = vld [vmem:[#allocation14 + $0x4] sm:$0xf0]  ;;  %v3648_v2 = vor.u32 %v3986_v51, %v3647_v28 }
 0x194   :  { %v3584_v32 = vor.u32 %v3970_v7, %v3583_v19  ;;  %2476 = vmatpush.bf16.msrb.mxu2 %v3596_v25  ;;  %v2502_v19 = vand.u32 127, %v2501_v22 }
 0x196   :  { %2451 = vmatpush.bf16.msrb.mxu3 %v3584_v32  ;;  %vm2503_vm1 = vcmp.lt.s32.totalorder %v2502_v19, 10 }
 0x197   :  { %2460 = vmatpush.bf16.msrb.mxu1 %v3680_v8  ;;  %2486 = vmatpush.bf16.msrb.mxu0 %v3684_v47  ;;  %v1802_v8 = vperm.slane %v1798_v42, 2 }
 0x19a   :  { %2201 = vmatmul.bf16.vlgmr.msra.gmra.mxu1 %v1733_v61  ;;  %2227 = vmatmul.bf16.vlgmr.msra.gmra.mxu0 %v1733_v61  ;;  %v3991_v61 = vld [vmem:[#allocation14 + $0xb4] sm:$0xf] }
 0x19b   :  { %v3676_v63 = vor.u32 %v3991_v61, %v3673_v62  ;;  %2461 = vmatpush.bf16.msrb.mxu1 %v3672_v58  ;;  %v2232_v61 = vld [vmem:[#allocation7] sm:$0xff] }
 0x19d   :  { %2487 = vmatpush.bf16.msrb.mxu0 %v3676_v63  ;;  %v2233_v63 = vld [vmem:[#allocation7 + $0x8] sm:$0xff] }
 0x19f   :  { %2462 = vmatpush.bf16.msrb.mxu1 %v3664_v9 }
 0x1a1   :  { %2488 = vmatpush.bf16.msrb.mxu0 %v3668_v13 }
 0x1a3   :  { %2463 = vmatpush.bf16.msrb.mxu1 %v3656_v21 }
 0x1a5   :  { %2489 = vmatpush.bf16.msrb.mxu0 %v3660_v26  ;;  %v2496_v26 = vld [vmem:[#allocation8] sm:$0xff] }
 0x1a7   :  { %2464 = vmatpush.bf16.msrb.mxu1 %v3648_v2 }
 0x1a9   :  { %2490 = vmatpush.bf16.msrb.mxu0 %v3652_v29 }
 0x1e9   :  { %v4430_v11 = vpop.f32.mrf.mxu3  ;;  %v4432_v15 = vpop.f32.mrf.mxu2 }
 0x1ea   :  { %v2138_v62 = vadd.f32 %v4430_v11, %v1800_v54  ;;  %v2278_v11 = vld [vmem:[%s4457_s9] sm:$0x3]  ;;  %s4268_s9 = smov [#allocation16]  }
 0x1eb   :  { %v2281_v14 = vperm.slane %v2278_v11, 1  ;;  %v2280_v21 = vperm.slane %v2278_v11, 0  ;;  %s2521_s3 = sshll.u32 %s4268_s9, 4  ;;  %s2522_s3 = int_to_ptr.vmem [resolvable:$true] %s2521_s3 }
 0x1f1   :  { %v2139_v33 = vpop.f32.mrf.mxu3  ;;  %v2165_v34 = vpop.f32.mrf.mxu2 }
 0x1f2   :  { %v3969_v33 = vld [vmem:[#allocation14 + $0x4] sm:$0xf]  ;;  %v3585_v34 = vld [vmem:[#allocation14 + $0x8] sm:$0xf0] }
 0x1f3   :  { %v3588_v37 = vor.u32 %v3969_v33, %v3585_v34 }
 0x1f5   :  { %2477 = vmatpush.bf16.msrb.mxu2 %v3588_v37 }
 0x1f9   :  { %v4434_v30 = vpop.f32.mrf.mxu3  ;;  %v4436_v52 = vpop.f32.mrf.mxu2 }
 0x1fa   :  { %v2190_v44 = vadd.f32 %v4434_v30, %v1802_v8  ;;  %v2216_v46 = vadd.f32 %v4436_v52, %v1803_v43  ;;  %v2164_v30 = vadd.f32 %v4432_v15, %v1801_v56 }
 0x201   :  { %v2191_v55 = vpop.f32.mrf.mxu3  ;;  %v2217_v17 = vpop.f32.mrf.mxu2 }
 0x207   :  { %v2150_v57 = vpop.f32.mrf.mxu1  ;;  %v2176_v36 = vpop.f32.mrf.mxu0 }
 0x208   :  { %v2151_v1 = vadd.f32 %v2150_v57, %v2138_v62  ;;  %v2177_v3 = vadd.f32 %v2176_v36, %v2164_v30 }
 0x20f   :  { %v2152_v39 = vpop.f32.mrf.mxu1  ;;  %v2178_v41 = vpop.f32.mrf.mxu0 }
 0x217   :  { %v2202_v47 = vpop.f32.mrf.mxu1  ;;  %v2228_v48 = vpop.f32.mrf.mxu0 }
 0x218   :  { %v2203_v49 = vadd.f32 %v2202_v47, %v2190_v44  ;;  %v2229_v50 = vadd.f32 %v2228_v48, %v2216_v46 }
 0x21a   :  { %v2234_v45 = vmul.f32 1.442695, %v2203_v49  ;;  %v2236_v53 = vmul.f32 1.442695, %v2229_v50 }
 0x21c   :  { %4018 = vpow2.f32 %v2234_v45 }
 0x21d   :  { %4020 = vpow2.f32 %v2236_v53 }
 0x21f   :  { %v2204_v58 = vpop.f32.mrf.mxu1  ;;  %v2230_v59 = vpop.f32.mrf.mxu0 }
 0x222   :  { %v4019_v0 = vpop.eup %4018 }
 0x223   :  { %v4021_v52 = vpop.eup %4020  ;;  %v2238_v27 = vmul.f32 %v4019_v0, %v2232_v61 }
 0x224   :  { %v2239_v4 = vmul.f32 %v4021_v52, %v2233_v63 }
 0x225   :  { %v2240_v5 = vadd.f32 %v2238_v27, %v2151_v1 }
 0x226   :  { %v2241_v6 = vadd.f32 %v2239_v4, %v2177_v3 }
 0x227   :  { %v2242_v9 = vmax.f32 %v2240_v5, 0.0 }
 0x228   :  { %v2243_v10 = vmax.f32 %v2241_v6, 0.0 }
 0x229   :  { %v2244_v12 = vpack.c.bf16 %v2242_v9, %v2242_v9 }
 0x22a   :  { %v2245_v60 = vpack.c.bf16 %v2243_v10, %v2243_v10 }
 0x22b   :  { %2452 = vmatmul.bf16.vlgmr.msrb.gmra.mxu3 %v2244_v12  ;;  %2478 = vmatmul.bf16.vlgmr.msrb.gmra.mxu2 %v2244_v12 }
 0x22c   :  { %2465 = vmatmul.bf16.vlgmr.msrb.gmra.mxu1 %v2245_v60  ;;  %2491 = vmatmul.bf16.vlgmr.msrb.gmra.mxu0 %v2245_v60 }
 0x2a9   :  { %v2466_v15 = vpop.f32.mrf.mxu1  ;;  %v2492_v13 = vpop.f32.mrf.mxu0 }
 0x2ae   :  { %v2453_v16 = vpop.f32.mrf.mxu3  ;;  %v2479_v31 = vpop.f32.mrf.mxu2 }
 0x2af   :  { %v2480_v55 = vadd.f32 %v2479_v31, %v2281_v14  ;;  %v2454_v25 = vadd.f32 %v2453_v16, %v2280_v21 }
 0x2b1   :  { %v2493_v17 = vadd.f32 %v2492_v13, %v2480_v55  ;;  %v2468_v40 = vpop.f32.mrf.mxu1  ;;  %v2494_v18 = vpop.f32.mrf.mxu0  ;;  %v2467_v28 = vadd.f32 %v2466_v15, %v2454_v25 }
 0x2b3   :  { %v2497_v20 = vmul.f32 1.442695, %v2493_v17 }
 0x2b5   :  { %4022 = vpow2.f32 %v2497_v20 }
 0x2b6   :  { %v2455_v23 = vpop.f32.mrf.mxu3  ;;  %v2481_v24 = vpop.f32.mrf.mxu2 }
 0x2bb   :  { %v4023_v7 = vpop.eup %4022 }
 0x2bc   :  { %v2499_v32 = vmul.f32 %v4023_v7, %v2496_v26 }
 0x2be   :  { %v2500_v51 = vadd.f32 %v2499_v32, %v2467_v28 }
 0x2c0   :  { %v2504_v33 = vsel %vm2503_vm1, %v2500_v51, -1e+30 }
 0x2c1   :  { %2505 = vmax.xlane.f32.xlu0 %v2504_v33 }
 0x334   :  { %v2506_v34 = vpop.xlane.xlu0 %2505 }
 0x335   :  { %v2507_v57 = vsub.f32 %v2504_v33, %v2506_v34 }
 0x337   :  { %v2508_v36 = vmul.f32 1.442695, %v2507_v57 }
 0x339   :  { %4024 = vpow2.f32 %v2508_v36 }
 0x33f   :  { %v4025_v2 = vpop.eup %4024 }
 0x340   :  { %2510 = vadd.xlane.f32.xlu0 %v4025_v2 }
 0x3b3   :  { %v2511_v37 = vpop.xlane.xlu0 %2510 }
 0x3b4   :  { %4026 = vlog2.f32 %v2511_v37 }
 0x3ba   :  { %v4027_v35 = vpop.eup %4026 }
 0x3bb   :  { %v2513_v38 = vmul.f32 0.6931472, %v4027_v35 }
 0x3bd   :  { %v2514_v29 = vsub.f32 %v2507_v57, %v2513_v38 }
 0x3bf   :  { %2515 = vst [vmem:[#allocation16] sm:$0xff] %v2514_v29 }
 0x3c0   :  { %2526 = dma.vmem_to_hbm [thread:$0]  %s2522_s3, 128, %s2524_s13, [#allocation4]  }
 0x3c1   :  { %4254 = dma.done.wait [#allocation4], 128  }
 0x3c2   :  { %4255 = vsyncadd [#allocation4], 4294967168 }
 0x3c3   :  { %2531 = vsyncpa [#allocation3], 1 }
 0x3c4   :  { %2532 = vsyncpa [#allocation6], 1 }
 0x3c5   :  { %2533 = vsyncpa [#allocation9], 1 }
 0x3c6   :  { %2534 = vsyncpa [#allocation12], 1 }
 0x3c7   :  { %2535 = vsyncpa [#allocation15], 1 }
 0x3c8   :  { %2536 = vsyncpa [#allocation4], 1 }

</bundles_post_ra>
